<compile_context>
chip_gen: v6e
topology: v6e:2x2x1
jax: 0.10.0
libtpu: 0.0.40
codegen_flags: <defaults>
</compile_context>

<pallas_src>
import jax
import jax.numpy as jnp
from jax.experimental import pallas as pl
from jax.experimental.pallas import tpu as pltpu

HP = 128          # per-gate lane slab = one full vreg lane width
ROW_ALIGN = 16    # bf16 sublane tile; keep every param block tile-aligned


def _round_up(x, m):
    return (x + m - 1) // m * m


def _layout(input_size, num_layers):
    """Row offsets of each parameter block inside the fused (rows, 4*HP) buffer."""
    i_pad = _round_up(max(input_size, 1), ROW_ALIGN)
    lay = {"i_pad": i_pad, "wih": [], "whh": []}
    r = 0
    lay["wih"].append(r); r += i_pad                 # layer-0 w_ih (rows >= I zero)
    for _ in range(1, num_layers):
        lay["wih"].append(r); r += HP                # w_ih layers 1..L-1 (rows >= H zero)
    for _ in range(num_layers):
        lay["whh"].append(r); r += HP                # w_hh (rows >= H zero)
    lay["bias"] = r; r += ROW_ALIGN                  # row l: LSTM bias l; row L: head bias
    lay["fcw"] = r; r += HP                          # fused (fc1|fc2) weight, lane-padded
    lay["rows"] = r
    return lay


def _make_lstm_kernel(L, T, B, H, lay):
    i_pad = lay["i_pad"]
    off_wih, off_whh = lay["wih"], lay["whh"]
    off_bias, off_fcw = lay["bias"], lay["fcw"]

    def kernel(x_ref, p_ref, out_ref):
        # x_ref: (T*B, i_pad) bf16 | p_ref: (rows, 4*HP) bf16 | out_ref: (B, HP) f32
        layer_in = x_ref[...]
        h = jnp.zeros((B, HP), jnp.float32)
        for l in range(L):                                       # static layer unroll
            in_rows = i_pad if l == 0 else HP
            w_ih = p_ref[off_wih[l]:off_wih[l] + in_rows, :]     # bf16, loaded once/layer
            w_hh = p_ref[off_whh[l]:off_whh[l] + HP, :]          # bf16, hoisted
            bias = p_ref[off_bias + l:off_bias + l + 1, :].astype(jnp.float32)
            # Input projection for ALL time steps at once (one bf16 MXU pass,
            # M = T*B) + bias; gate slabs are [i | f | o | g], each HP lanes.
            xproj = jnp.dot(layer_in, w_ih,
                            preferred_element_type=jnp.float32) + bias   # (T*B, 4*HP)
            h = jnp.zeros((B, HP), jnp.float32)
            c = jnp.zeros((B, HP), jnp.float32)
            hs = []
            # Serial recurrence, fully unrolled (T static & small).  Only the
            # bf16 h @ w_hh matmul + a little VPU/EUP math stay on the chain.
            # (A VPU multiply-add tree for this K=32 product is a possible
            #  alternative -- measure via bundle dump before switching.)
            for t in range(T):
                gates = xproj[t * B:(t + 1) * B, :] + jnp.dot(
                    h.astype(jnp.bfloat16), w_hh,
                    preferred_element_type=jnp.float32)          # (B, 4*HP) f32
                # One EUP pass for all four gates: i/f/o columns were
                # pre-scaled by 0.5, so sigmoid = 0.5*tanh(gates) + 0.5.
                tg = jnp.tanh(gates)
                ifo = 0.5 * tg[:, :3 * HP] + 0.5                 # lane-aligned slabs
                g_g = tg[:, 3 * HP:]
                c = ifo[:, HP:2 * HP] * c + ifo[:, :HP] * g_g
                h = ifo[:, 2 * HP:3 * HP] * jnp.tanh(c)
                if l + 1 < L:
                    hs.append(h)
            if l + 1 < L:
                # Inter-layer sequence carried as values (no VMEM scratch).
                layer_in = jnp.concatenate(hs, axis=0).astype(jnp.bfloat16)
        # Fused heads, lane-dense 128-wide store; wrapper slices real columns.
        fcw = p_ref[off_fcw:off_fcw + HP, :HP]
        fcb = p_ref[off_bias + L:off_bias + L + 1, :HP].astype(jnp.float32)
        out_ref[...] = jnp.dot(h.astype(jnp.bfloat16), fcw,
                               preferred_element_type=jnp.float32) + fcb

    return kernel


def init_params(key, input_size, hidden_size, num_layers, output_size):
    """PyTorch-style uniform(-k,k) init, packed into one fused bf16 buffer."""
    H, I, L, O = hidden_size, input_size, num_layers, output_size
    assert H <= HP and (2 + O) <= HP
    k = 1.0 / float(H) ** 0.5
    keys = jax.random.split(key, 4 * L + 4)
    lay = _layout(I, L)

    def pack_gate_cols(w):
        """(rows, 4H) PyTorch [i,f,g,o] -> (rows, 4*HP) slabs [i|f|o|g], each
        zero-padded to HP lanes; i/f/o pre-scaled by 0.5 (tanh-form sigmoid)."""
        rows = w.shape[0]
        out = jnp.zeros((rows, 4 * HP), jnp.float32)
        out = out.at[:, 0 * HP:0 * HP + H].set(0.5 * w[:, 0 * H:1 * H])   # i
        out = out.at[:, 1 * HP:1 * HP + H].set(0.5 * w[:, 1 * H:2 * H])   # f
        out = out.at[:, 2 * HP:2 * HP + H].set(0.5 * w[:, 3 * H:4 * H])   # o
        out = out.at[:, 3 * HP:3 * HP + H].set(w[:, 2 * H:3 * H])         # g
        return out

    buf = jnp.zeros((lay["rows"], 4 * HP), jnp.float32)
    raw_layers = []
    for l in range(L):
        in_l = I if l == 0 else H
        kw0, kw1, kb0, kb1 = keys[4 * l:4 * l + 4]
        w_ih = jax.random.uniform(kw0, (in_l, 4 * H), jnp.float32, -k, k)
        w_hh = jax.random.uniform(kw1, (H, 4 * H), jnp.float32, -k, k)
        b_ih = jax.random.uniform(kb0, (4 * H,), jnp.float32, -k, k)
        b_hh = jax.random.uniform(kb1, (4 * H,), jnp.float32, -k, k)
        raw_layers.append((w_ih, w_hh, b_ih + b_hh))
        r = lay["wih"][l]
        buf = buf.at[r:r + in_l, :].set(pack_gate_cols(w_ih))
        r = lay["whh"][l]
        buf = buf.at[r:r + H, :].set(pack_gate_cols(w_hh))
        buf = buf.at[lay["bias"] + l, :].set(
            pack_gate_cols((b_ih + b_hh).reshape(1, 4 * H))[0])

    kf1w, kf1b, kf2w, kf2b = keys[4 * L:]
    fc1w = jax.random.uniform(kf1w, (H, 2), jnp.float32, -k, k)
    fc1b = jax.random.uniform(kf1b, (2,), jnp.float32, -k, k)
    fc2w = jax.random.uniform(kf2w, (H, O), jnp.float32, -k, k)
    fc2b = jax.random.uniform(kf2b, (O,), jnp.float32, -k, k)
    # Fused, lane-padded heads (real data in first 2+O of HP output lanes; all
    # padded rows/columns stay zero so pad lanes never leak into real outputs).
    buf = buf.at[lay["fcw"]:lay["fcw"] + H, 0:2].set(fc1w)
    buf = buf.at[lay["fcw"]:lay["fcw"] + H, 2:2 + O].set(fc2w)
    buf = buf.at[lay["bias"] + L, 0:2].set(fc1b)
    buf = buf.at[lay["bias"] + L, 2:2 + O].set(fc2b)

    packed = dict(buf=buf.astype(jnp.bfloat16), layout=lay, sizes=(L, H, I, O))
    heads = (fc1w, fc1b.reshape(1, 2), fc2w, fc2b.reshape(1, O))
    return packed, raw_layers, heads


def lstm_model_forward(x, packed):
    """x: (B, input_size, seq_len) — same layout the PyTorch module receives."""
    L, H, I, O = packed["sizes"]
    lay = packed["layout"]
    B, i_in, T = x.shape
    assert i_in == I
    i_pad = lay["i_pad"]

    # x.permute(0,2,1) of the module, time-major flatten, lane-pad, bf16 cast.
    xt = jnp.transpose(x, (2, 0, 1)).reshape(T * B, I).astype(jnp.float32)
    x_pad = jnp.zeros((T * B, i_pad), jnp.float32).at[:, :I].set(xt)
    x_pad = x_pad.astype(jnp.bfloat16)

    # TODO(synk): for multi-request serving, vmap / add a "parallel" grid axis
    # over independent sequences (uses both v7x TensorCores, fills MXU rows).
    vspec = pl.BlockSpec(memory_space=pltpu.MemorySpace.VMEM)
    out = pl.pallas_call(
        _make_lstm_kernel(L, T, B, H, lay),
        out_shape=jax.ShapeDtypeStruct((B, HP), jnp.float32),
        in_specs=[vspec, vspec],
        out_specs=vspec,
    )(x_pad, packed["buf"])

    return out[:, :2], out[:, 2:2 + O]


def reference_forward(x, raw_layers, fc1w, fc1b, fc2w, fc2b):
    """Pure-JAX f32 reference mirroring nn.LSTM(batch_first=True) eval semantics."""
    B, I, T = x.shape
    xt = jnp.transpose(x, (0, 2, 1)).astype(jnp.float32)    # (B, T, I)
    H = raw_layers[0][1].shape[0]
    layer_in = xt
    for (w_ih, w_hh, bias) in raw_layers:
        h = jnp.zeros((B, H), jnp.float32)
        c = jnp.zeros((B, H), jnp.float32)
        outs = []
        for t in range(T):
            gates = layer_in[:, t, :] @ w_ih + h @ w_hh + bias
            i_g = jax.nn.sigmoid(gates[:, 0 * H:1 * H])
            f_g = jax.nn.sigmoid(gates[:, 1 * H:2 * H])
            g_g = jnp.tanh(gates[:, 2 * H:3 * H])
            o_g = jax.nn.sigmoid(gates[:, 3 * H:4 * H])
            c = f_g * c + i_g * g_g
            h = o_g * jnp.tanh(c)
            outs.append(h)
        layer_in = jnp.stack(outs, axis=1)
    last = layer_in[:, -1, :]
    return last @ fc1w + fc1b, last @ fc2w + fc2b


if __name__ == "__main__":
    # Module config (small, consistent with the forward pass):
    input_size, hidden_size, num_layers, output_size = 4, 32, 2, 3
    batch, seq_len = 2, 8

    key = jax.random.PRNGKey(0)
    kx, kp = jax.random.split(key)
    # PyTorch-side input layout: (batch, input_size, seq_len)
    x = jax.random.normal(kx, (batch, input_size, seq_len), jnp.float32)

    packed, raw_layers, heads = init_params(kp, input_size, hidden_size,
                                            num_layers, output_size)

    t1, t2 = lstm_model_forward(x, packed)
    t1, t2 = jax.block_until_ready((t1, t2))

    # Cross-check against the pure-f32 reference (PyTorch gate order/weights).
    # Tolerance loosened because the kernel uses bf16 MXU operands.
    r1, r2 = reference_forward(x, raw_layers, *heads)
    assert t1.shape == (batch, 2) and t2.shape == (batch, output_size)
    assert jnp.allclose(t1, r1, atol=5e-2, rtol=5e-2)
    assert jnp.allclose(t2, r2, atol=5e-2, rtol=5e-2)

    print("KERNEL_OK")
</pallas_src>

<mosaic_0001>
module attributes {stable_mosaic.version = 11 : i64} {
  func.func @kernel(%arg0: memref<16x16xbf16, #tpu.memory_space<vmem>>, %arg1: memref<544x512xbf16, #tpu.memory_space<vmem>>, %arg2: memref<2x128xf32, #tpu.memory_space<vmem>>) attributes {dimension_semantics = [], scalar_prefetch = 0 : i64, scratch_operands = 0 : i64, tpu.core_type = #tpu.core_type<tc>} {
    %c0 = arith.constant 0 : index
    %c0_0 = arith.constant 0 : index
    %0 = vector.load %arg0[%c0, %c0_0] : memref<16x16xbf16, #tpu.memory_space<vmem>>, vector<16x16xbf16>
    %c0_1 = arith.constant 0 : index
    %c0_2 = arith.constant 0 : index
    %1 = vector.load %arg1[%c0_1, %c0_2] : memref<544x512xbf16, #tpu.memory_space<vmem>>, vector<16x512xbf16>
    %c144 = arith.constant 144 : index
    %c0_3 = arith.constant 0 : index
    %2 = vector.load %arg1[%c144, %c0_3] : memref<544x512xbf16, #tpu.memory_space<vmem>>, vector<128x512xbf16>
    %c400 = arith.constant 400 : index
    %c0_4 = arith.constant 0 : index
    %3 = vector.load %arg1[%c400, %c0_4] : memref<544x512xbf16, #tpu.memory_space<vmem>>, vector<1x512xbf16>
    %4 = arith.extf %3 : vector<1x512xbf16> to vector<1x512xf32>
    %cst = arith.constant dense<0.000000e+00> : vector<16x512xf32>
    %5 = tpu.matmul %0, %1, %cst {dimension_numbers = #tpu.dot_dimension_numbers<[1], [0], [0], [1], [0, 0, 1, 1], [], []>} : vector<16x16xbf16>, vector<16x512xbf16>, vector<16x512xf32> -> vector<16x512xf32>
    %6 = vector.broadcast %4 : vector<1x512xf32> to vector<16x512xf32>
    %7 = arith.addf %5, %6 : vector<16x512xf32>
    %cst_5 = arith.constant 0.000000e+00 : f32
    %8 = vector.broadcast %cst_5 : f32 to vector<2x128xf32>
    %cst_6 = arith.constant 0.000000e+00 : f32
    %9 = vector.broadcast %cst_6 : f32 to vector<2x128xf32>
    %10 = vector.extract_strided_slice %7 {offsets = [0, 0], sizes = [2, 512], strides = [1, 1]} : vector<16x512xf32> to vector<2x512xf32>
    %11 = arith.truncf %8 : vector<2x128xf32> to vector<2x128xbf16>
    %cst_7 = arith.constant dense<0.000000e+00> : vector<2x512xf32>
    %12 = tpu.matmul %11, %2, %cst_7 {dimension_numbers = #tpu.dot_dimension_numbers<[1], [0], [0], [1], [0, 0, 1, 1], [], []>} : vector<2x128xbf16>, vector<128x512xbf16>, vector<2x512xf32> -> vector<2x512xf32>
    %13 = arith.addf %10, %12 : vector<2x512xf32>
    %14 = math.tanh %13 : vector<2x512xf32>
    %15 = vector.extract_strided_slice %14 {offsets = [0, 0], sizes = [2, 384], strides = [1, 1]} : vector<2x512xf32> to vector<2x384xf32>
    %cst_8 = arith.constant 5.000000e-01 : f32
    %16 = vector.broadcast %cst_8 : f32 to vector<2x384xf32>
    %17 = arith.mulf %16, %15 : vector<2x384xf32>
    %cst_9 = arith.constant 5.000000e-01 : f32
    %18 = vector.broadcast %cst_9 : f32 to vector<2x384xf32>
    %19 = arith.addf %17, %18 : vector<2x384xf32>
    %20 = vector.extract_strided_slice %14 {offsets = [0, 384], sizes = [2, 128], strides = [1, 1]} : vector<2x512xf32> to vector<2x128xf32>
    %21 = vector.extract_strided_slice %19 {offsets = [0, 128], sizes = [2, 128], strides = [1, 1]} : vector<2x384xf32> to vector<2x128xf32>
    %22 = arith.mulf %21, %9 : vector<2x128xf32>
    %23 = vector.extract_strided_slice %19 {offsets = [0, 0], sizes = [2, 128], strides = [1, 1]} : vector<2x384xf32> to vector<2x128xf32>
    %24 = arith.mulf %23, %20 : vector<2x128xf32>
    %25 = arith.addf %22, %24 : vector<2x128xf32>
    %26 = vector.extract_strided_slice %19 {offsets = [0, 256], sizes = [2, 128], strides = [1, 1]} : vector<2x384xf32> to vector<2x128xf32>
    %27 = math.tanh %25 : vector<2x128xf32>
    %28 = arith.mulf %26, %27 : vector<2x128xf32>
    %29 = vector.extract_strided_slice %7 {offsets = [2, 0], sizes = [2, 512], strides = [1, 1]} : vector<16x512xf32> to vector<2x512xf32>
    %30 = arith.truncf %28 : vector<2x128xf32> to vector<2x128xbf16>
    %cst_10 = arith.constant dense<0.000000e+00> : vector<2x512xf32>
    %31 = tpu.matmul %30, %2, %cst_10 {dimension_numbers = #tpu.dot_dimension_numbers<[1], [0], [0], [1], [0, 0, 1, 1], [], []>} : vector<2x128xbf16>, vector<128x512xbf16>, vector<2x512xf32> -> vector<2x512xf32>
    %32 = arith.addf %29, %31 : vector<2x512xf32>
    %33 = math.tanh %32 : vector<2x512xf32>
    %34 = vector.extract_strided_slice %33 {offsets = [0, 0], sizes = [2, 384], strides = [1, 1]} : vector<2x512xf32> to vector<2x384xf32>
    %cst_11 = arith.constant 5.000000e-01 : f32
    %35 = vector.broadcast %cst_11 : f32 to vector<2x384xf32>
    %36 = arith.mulf %35, %34 : vector<2x384xf32>
    %cst_12 = arith.constant 5.000000e-01 : f32
    %37 = vector.broadcast %cst_12 : f32 to vector<2x384xf32>
    %38 = arith.addf %36, %37 : vector<2x384xf32>
    %39 = vector.extract_strided_slice %33 {offsets = [0, 384], sizes = [2, 128], strides = [1, 1]} : vector<2x512xf32> to vector<2x128xf32>
    %40 = vector.extract_strided_slice %38 {offsets = [0, 128], sizes = [2, 128], strides = [1, 1]} : vector<2x384xf32> to vector<2x128xf32>
    %41 = arith.mulf %40, %25 : vector<2x128xf32>
    %42 = vector.extract_strided_slice %38 {offsets = [0, 0], sizes = [2, 128], strides = [1, 1]} : vector<2x384xf32> to vector<2x128xf32>
    %43 = arith.mulf %42, %39 : vector<2x128xf32>
    %44 = arith.addf %41, %43 : vector<2x128xf32>
    %45 = vector.extract_strided_slice %38 {offsets = [0, 256], sizes = [2, 128], strides = [1, 1]} : vector<2x384xf32> to vector<2x128xf32>
    %46 = math.tanh %44 : vector<2x128xf32>
    %47 = arith.mulf %45, %46 : vector<2x128xf32>
    %48 = vector.extract_strided_slice %7 {offsets = [4, 0], sizes = [2, 512], strides = [1, 1]} : vector<16x512xf32> to vector<2x512xf32>
    %49 = arith.truncf %47 : vector<2x128xf32> to vector<2x128xbf16>
    %cst_13 = arith.constant dense<0.000000e+00> : vector<2x512xf32>
    %50 = tpu.matmul %49, %2, %cst_13 {dimension_numbers = #tpu.dot_dimension_numbers<[1], [0], [0], [1], [0, 0, 1, 1], [], []>} : vector<2x128xbf16>, vector<128x512xbf16>, vector<2x512xf32> -> vector<2x512xf32>
    %51 = arith.addf %48, %50 : vector<2x512xf32>
    %52 = math.tanh %51 : vector<2x512xf32>
    %53 = vector.extract_strided_slice %52 {offsets = [0, 0], sizes = [2, 384], strides = [1, 1]} : vector<2x512xf32> to vector<2x384xf32>
    %cst_14 = arith.constant 5.000000e-01 : f32
    %54 = vector.broadcast %cst_14 : f32 to vector<2x384xf32>
    %55 = arith.mulf %54, %53 : vector<2x384xf32>
    %cst_15 = arith.constant 5.000000e-01 : f32
    %56 = vector.broadcast %cst_15 : f32 to vector<2x384xf32>
    %57 = arith.addf %55, %56 : vector<2x384xf32>
    %58 = vector.extract_strided_slice %52 {offsets = [0, 384], sizes = [2, 128], strides = [1, 1]} : vector<2x512xf32> to vector<2x128xf32>
    %59 = vector.extract_strided_slice %57 {offsets = [0, 128], sizes = [2, 128], strides = [1, 1]} : vector<2x384xf32> to vector<2x128xf32>
    %60 = arith.mulf %59, %44 : vector<2x128xf32>
    %61 = vector.extract_strided_slice %57 {offsets = [0, 0], sizes = [2, 128], strides = [1, 1]} : vector<2x384xf32> to vector<2x128xf32>
    %62 = arith.mulf %61, %58 : vector<2x128xf32>
    %63 = arith.addf %60, %62 : vector<2x128xf32>
    %64 = vector.extract_strided_slice %57 {offsets = [0, 256], sizes = [2, 128], strides = [1, 1]} : vector<2x384xf32> to vector<2x128xf32>
    %65 = math.tanh %63 : vector<2x128xf32>
    %66 = arith.mulf %64, %65 : vector<2x128xf32>
    %67 = vector.extract_strided_slice %7 {offsets = [6, 0], sizes = [2, 512], strides = [1, 1]} : vector<16x512xf32> to vector<2x512xf32>
    %68 = arith.truncf %66 : vector<2x128xf32> to vector<2x128xbf16>
    %cst_16 = arith.constant dense<0.000000e+00> : vector<2x512xf32>
    %69 = tpu.matmul %68, %2, %cst_16 {dimension_numbers = #tpu.dot_dimension_numbers<[1], [0], [0], [1], [0, 0, 1, 1], [], []>} : vector<2x128xbf16>, vector<128x512xbf16>, vector<2x512xf32> -> vector<2x512xf32>
    %70 = arith.addf %67, %69 : vector<2x512xf32>
    %71 = math.tanh %70 : vector<2x512xf32>
    %72 = vector.extract_strided_slice %71 {offsets = [0, 0], sizes = [2, 384], strides = [1, 1]} : vector<2x512xf32> to vector<2x384xf32>
    %cst_17 = arith.constant 5.000000e-01 : f32
    %73 = vector.broadcast %cst_17 : f32 to vector<2x384xf32>
    %74 = arith.mulf %73, %72 : vector<2x384xf32>
    %cst_18 = arith.constant 5.000000e-01 : f32
    %75 = vector.broadcast %cst_18 : f32 to vector<2x384xf32>
    %76 = arith.addf %74, %75 : vector<2x384xf32>
    %77 = vector.extract_strided_slice %71 {offsets = [0, 384], sizes = [2, 128], strides = [1, 1]} : vector<2x512xf32> to vector<2x128xf32>
    %78 = vector.extract_strided_slice %76 {offsets = [0, 128], sizes = [2, 128], strides = [1, 1]} : vector<2x384xf32> to vector<2x128xf32>
    %79 = arith.mulf %78, %63 : vector<2x128xf32>
    %80 = vector.extract_strided_slice %76 {offsets = [0, 0], sizes = [2, 128], strides = [1, 1]} : vector<2x384xf32> to vector<2x128xf32>
    %81 = arith.mulf %80, %77 : vector<2x128xf32>
    %82 = arith.addf %79, %81 : vector<2x128xf32>
    %83 = vector.extract_strided_slice %76 {offsets = [0, 256], sizes = [2, 128], strides = [1, 1]} : vector<2x384xf32> to vector<2x128xf32>
    %84 = math.tanh %82 : vector<2x128xf32>
    %85 = arith.mulf %83, %84 : vector<2x128xf32>
    %86 = vector.extract_strided_slice %7 {offsets = [8, 0], sizes = [2, 512], strides = [1, 1]} : vector<16x512xf32> to vector<2x512xf32>
    %87 = arith.truncf %85 : vector<2x128xf32> to vector<2x128xbf16>
    %cst_19 = arith.constant dense<0.000000e+00> : vector<2x512xf32>
    %88 = tpu.matmul %87, %2, %cst_19 {dimension_numbers = #tpu.dot_dimension_numbers<[1], [0], [0], [1], [0, 0, 1, 1], [], []>} : vector<2x128xbf16>, vector<128x512xbf16>, vector<2x512xf32> -> vector<2x512xf32>
    %89 = arith.addf %86, %88 : vector<2x512xf32>
    %90 = math.tanh %89 : vector<2x512xf32>
    %91 = vector.extract_strided_slice %90 {offsets = [0, 0], sizes = [2, 384], strides = [1, 1]} : vector<2x512xf32> to vector<2x384xf32>
    %cst_20 = arith.constant 5.000000e-01 : f32
    %92 = vector.broadcast %cst_20 : f32 to vector<2x384xf32>
    %93 = arith.mulf %92, %91 : vector<2x384xf32>
    %cst_21 = arith.constant 5.000000e-01 : f32
    %94 = vector.broadcast %cst_21 : f32 to vector<2x384xf32>
    %95 = arith.addf %93, %94 : vector<2x384xf32>
    %96 = vector.extract_strided_slice %90 {offsets = [0, 384], sizes = [2, 128], strides = [1, 1]} : vector<2x512xf32> to vector<2x128xf32>
    %97 = vector.extract_strided_slice %95 {offsets = [0, 128], sizes = [2, 128], strides = [1, 1]} : vector<2x384xf32> to vector<2x128xf32>
    %98 = arith.mulf %97, %82 : vector<2x128xf32>
    %99 = vector.extract_strided_slice %95 {offsets = [0, 0], sizes = [2, 128], strides = [1, 1]} : vector<2x384xf32> to vector<2x128xf32>
    %100 = arith.mulf %99, %96 : vector<2x128xf32>
    %101 = arith.addf %98, %100 : vector<2x128xf32>
    %102 = vector.extract_strided_slice %95 {offsets = [0, 256], sizes = [2, 128], strides = [1, 1]} : vector<2x384xf32> to vector<2x128xf32>
    %103 = math.tanh %101 : vector<2x128xf32>
    %104 = arith.mulf %102, %103 : vector<2x128xf32>
    %105 = vector.extract_strided_slice %7 {offsets = [10, 0], sizes = [2, 512], strides = [1, 1]} : vector<16x512xf32> to vector<2x512xf32>
    %106 = arith.truncf %104 : vector<2x128xf32> to vector<2x128xbf16>
    %cst_22 = arith.constant dense<0.000000e+00> : vector<2x512xf32>
    %107 = tpu.matmul %106, %2, %cst_22 {dimension_numbers = #tpu.dot_dimension_numbers<[1], [0], [0], [1], [0, 0, 1, 1], [], []>} : vector<2x128xbf16>, vector<128x512xbf16>, vector<2x512xf32> -> vector<2x512xf32>
    %108 = arith.addf %105, %107 : vector<2x512xf32>
    %109 = math.tanh %108 : vector<2x512xf32>
    %110 = vector.extract_strided_slice %109 {offsets = [0, 0], sizes = [2, 384], strides = [1, 1]} : vector<2x512xf32> to vector<2x384xf32>
    %cst_23 = arith.constant 5.000000e-01 : f32
    %111 = vector.broadcast %cst_23 : f32 to vector<2x384xf32>
    %112 = arith.mulf %111, %110 : vector<2x384xf32>
    %cst_24 = arith.constant 5.000000e-01 : f32
    %113 = vector.broadcast %cst_24 : f32 to vector<2x384xf32>
    %114 = arith.addf %112, %113 : vector<2x384xf32>
    %115 = vector.extract_strided_slice %109 {offsets = [0, 384], sizes = [2, 128], strides = [1, 1]} : vector<2x512xf32> to vector<2x128xf32>
    %116 = vector.extract_strided_slice %114 {offsets = [0, 128], sizes = [2, 128], strides = [1, 1]} : vector<2x384xf32> to vector<2x128xf32>
    %117 = arith.mulf %116, %101 : vector<2x128xf32>
    %118 = vector.extract_strided_slice %114 {offsets = [0, 0], sizes = [2, 128], strides = [1, 1]} : vector<2x384xf32> to vector<2x128xf32>
    %119 = arith.mulf %118, %115 : vector<2x128xf32>
    %120 = arith.addf %117, %119 : vector<2x128xf32>
    %121 = vector.extract_strided_slice %114 {offsets = [0, 256], sizes = [2, 128], strides = [1, 1]} : vector<2x384xf32> to vector<2x128xf32>
    %122 = math.tanh %120 : vector<2x128xf32>
    %123 = arith.mulf %121, %122 : vector<2x128xf32>
    %124 = vector.extract_strided_slice %7 {offsets = [12, 0], sizes = [2, 512], strides = [1, 1]} : vector<16x512xf32> to vector<2x512xf32>
    %125 = arith.truncf %123 : vector<2x128xf32> to vector<2x128xbf16>
    %cst_25 = arith.constant dense<0.000000e+00> : vector<2x512xf32>
    %126 = tpu.matmul %125, %2, %cst_25 {dimension_numbers = #tpu.dot_dimension_numbers<[1], [0], [0], [1], [0, 0, 1, 1], [], []>} : vector<2x128xbf16>, vector<128x512xbf16>, vector<2x512xf32> -> vector<2x512xf32>
    %127 = arith.addf %124, %126 : vector<2x512xf32>
    %128 = math.tanh %127 : vector<2x512xf32>
    %129 = vector.extract_strided_slice %128 {offsets = [0, 0], sizes = [2, 384], strides = [1, 1]} : vector<2x512xf32> to vector<2x384xf32>
    %cst_26 = arith.constant 5.000000e-01 : f32
    %130 = vector.broadcast %cst_26 : f32 to vector<2x384xf32>
    %131 = arith.mulf %130, %129 : vector<2x384xf32>
    %cst_27 = arith.constant 5.000000e-01 : f32
    %132 = vector.broadcast %cst_27 : f32 to vector<2x384xf32>
    %133 = arith.addf %131, %132 : vector<2x384xf32>
    %134 = vector.extract_strided_slice %128 {offsets = [0, 384], sizes = [2, 128], strides = [1, 1]} : vector<2x512xf32> to vector<2x128xf32>
    %135 = vector.extract_strided_slice %133 {offsets = [0, 128], sizes = [2, 128], strides = [1, 1]} : vector<2x384xf32> to vector<2x128xf32>
    %136 = arith.mulf %135, %120 : vector<2x128xf32>
    %137 = vector.extract_strided_slice %133 {offsets = [0, 0], sizes = [2, 128], strides = [1, 1]} : vector<2x384xf32> to vector<2x128xf32>
    %138 = arith.mulf %137, %134 : vector<2x128xf32>
    %139 = arith.addf %136, %138 : vector<2x128xf32>
    %140 = vector.extract_strided_slice %133 {offsets = [0, 256], sizes = [2, 128], strides = [1, 1]} : vector<2x384xf32> to vector<2x128xf32>
    %141 = math.tanh %139 : vector<2x128xf32>
    %142 = arith.mulf %140, %141 : vector<2x128xf32>
    %143 = vector.extract_strided_slice %7 {offsets = [14, 0], sizes = [2, 512], strides = [1, 1]} : vector<16x512xf32> to vector<2x512xf32>
    %144 = arith.truncf %142 : vector<2x128xf32> to vector<2x128xbf16>
    %cst_28 = arith.constant dense<0.000000e+00> : vector<2x512xf32>
    %145 = tpu.matmul %144, %2, %cst_28 {dimension_numbers = #tpu.dot_dimension_numbers<[1], [0], [0], [1], [0, 0, 1, 1], [], []>} : vector<2x128xbf16>, vector<128x512xbf16>, vector<2x512xf32> -> vector<2x512xf32>
    %146 = arith.addf %143, %145 : vector<2x512xf32>
    %147 = math.tanh %146 : vector<2x512xf32>
    %148 = vector.extract_strided_slice %147 {offsets = [0, 0], sizes = [2, 384], strides = [1, 1]} : vector<2x512xf32> to vector<2x384xf32>
    %cst_29 = arith.constant 5.000000e-01 : f32
    %149 = vector.broadcast %cst_29 : f32 to vector<2x384xf32>
    %150 = arith.mulf %149, %148 : vector<2x384xf32>
    %cst_30 = arith.constant 5.000000e-01 : f32
    %151 = vector.broadcast %cst_30 : f32 to vector<2x384xf32>
    %152 = arith.addf %150, %151 : vector<2x384xf32>
    %153 = vector.extract_strided_slice %147 {offsets = [0, 384], sizes = [2, 128], strides = [1, 1]} : vector<2x512xf32> to vector<2x128xf32>
    %154 = vector.extract_strided_slice %152 {offsets = [0, 128], sizes = [2, 128], strides = [1, 1]} : vector<2x384xf32> to vector<2x128xf32>
    %155 = arith.mulf %154, %139 : vector<2x128xf32>
    %156 = vector.extract_strided_slice %152 {offsets = [0, 0], sizes = [2, 128], strides = [1, 1]} : vector<2x384xf32> to vector<2x128xf32>
    %157 = arith.mulf %156, %153 : vector<2x128xf32>
    %158 = arith.addf %155, %157 : vector<2x128xf32>
    %159 = vector.extract_strided_slice %152 {offsets = [0, 256], sizes = [2, 128], strides = [1, 1]} : vector<2x384xf32> to vector<2x128xf32>
    %160 = math.tanh %158 : vector<2x128xf32>
    %161 = arith.mulf %159, %160 : vector<2x128xf32>
    %162 = tpu.concatenate %28, %47, %66, %85, %104, %123, %142, %161 in 0 : vector<2x128xf32>, vector<2x128xf32>, vector<2x128xf32>, vector<2x128xf32>, vector<2x128xf32>, vector<2x128xf32>, vector<2x128xf32>, vector<2x128xf32> -> vector<16x128xf32>
    %163 = arith.truncf %162 : vector<16x128xf32> to vector<16x128xbf16>
    %c16 = arith.constant 16 : index
    %c0_31 = arith.constant 0 : index
    %164 = vector.load %arg1[%c16, %c0_31] : memref<544x512xbf16, #tpu.memory_space<vmem>>, vector<128x512xbf16>
    %c272 = arith.constant 272 : index
    %c0_32 = arith.constant 0 : index
    %165 = vector.load %arg1[%c272, %c0_32] : memref<544x512xbf16, #tpu.memory_space<vmem>>, vector<128x512xbf16>
    %c401 = arith.constant 401 : index
    %c0_33 = arith.constant 0 : index
    %166 = vector.load %arg1[%c401, %c0_33] : memref<544x512xbf16, #tpu.memory_space<vmem>>, vector<1x512xbf16>
    %167 = arith.extf %166 : vector<1x512xbf16> to vector<1x512xf32>
    %cst_34 = arith.constant dense<0.000000e+00> : vector<16x512xf32>
    %168 = tpu.matmul %163, %164, %cst_34 {dimension_numbers = #tpu.dot_dimension_numbers<[1], [0], [0], [1], [0, 0, 1, 1], [], []>} : vector<16x128xbf16>, vector<128x512xbf16>, vector<16x512xf32> -> vector<16x512xf32>
    %169 = vector.broadcast %167 : vector<1x512xf32> to vector<16x512xf32>
    %170 = arith.addf %168, %169 : vector<16x512xf32>
    %cst_35 = arith.constant 0.000000e+00 : f32
    %171 = vector.broadcast %cst_35 : f32 to vector<2x128xf32>
    %cst_36 = arith.constant 0.000000e+00 : f32
    %172 = vector.broadcast %cst_36 : f32 to vector<2x128xf32>
    %173 = vector.extract_strided_slice %170 {offsets = [0, 0], sizes = [2, 512], strides = [1, 1]} : vector<16x512xf32> to vector<2x512xf32>
    %174 = arith.truncf %171 : vector<2x128xf32> to vector<2x128xbf16>
    %cst_37 = arith.constant dense<0.000000e+00> : vector<2x512xf32>
    %175 = tpu.matmul %174, %165, %cst_37 {dimension_numbers = #tpu.dot_dimension_numbers<[1], [0], [0], [1], [0, 0, 1, 1], [], []>} : vector<2x128xbf16>, vector<128x512xbf16>, vector<2x512xf32> -> vector<2x512xf32>
    %176 = arith.addf %173, %175 : vector<2x512xf32>
    %177 = math.tanh %176 : vector<2x512xf32>
    %178 = vector.extract_strided_slice %177 {offsets = [0, 0], sizes = [2, 384], strides = [1, 1]} : vector<2x512xf32> to vector<2x384xf32>
    %cst_38 = arith.constant 5.000000e-01 : f32
    %179 = vector.broadcast %cst_38 : f32 to vector<2x384xf32>
    %180 = arith.mulf %179, %178 : vector<2x384xf32>
    %cst_39 = arith.constant 5.000000e-01 : f32
    %181 = vector.broadcast %cst_39 : f32 to vector<2x384xf32>
    %182 = arith.addf %180, %181 : vector<2x384xf32>
    %183 = vector.extract_strided_slice %177 {offsets = [0, 384], sizes = [2, 128], strides = [1, 1]} : vector<2x512xf32> to vector<2x128xf32>
    %184 = vector.extract_strided_slice %182 {offsets = [0, 128], sizes = [2, 128], strides = [1, 1]} : vector<2x384xf32> to vector<2x128xf32>
    %185 = arith.mulf %184, %172 : vector<2x128xf32>
    %186 = vector.extract_strided_slice %182 {offsets = [0, 0], sizes = [2, 128], strides = [1, 1]} : vector<2x384xf32> to vector<2x128xf32>
    %187 = arith.mulf %186, %183 : vector<2x128xf32>
    %188 = arith.addf %185, %187 : vector<2x128xf32>
    %189 = vector.extract_strided_slice %182 {offsets = [0, 256], sizes = [2, 128], strides = [1, 1]} : vector<2x384xf32> to vector<2x128xf32>
    %190 = math.tanh %188 : vector<2x128xf32>
    %191 = arith.mulf %189, %190 : vector<2x128xf32>
    %192 = vector.extract_strided_slice %170 {offsets = [2, 0], sizes = [2, 512], strides = [1, 1]} : vector<16x512xf32> to vector<2x512xf32>
    %193 = arith.truncf %191 : vector<2x128xf32> to vector<2x128xbf16>
    %cst_40 = arith.constant dense<0.000000e+00> : vector<2x512xf32>
    %194 = tpu.matmul %193, %165, %cst_40 {dimension_numbers = #tpu.dot_dimension_numbers<[1], [0], [0], [1], [0, 0, 1, 1], [], []>} : vector<2x128xbf16>, vector<128x512xbf16>, vector<2x512xf32> -> vector<2x512xf32>
    %195 = arith.addf %192, %194 : vector<2x512xf32>
    %196 = math.tanh %195 : vector<2x512xf32>
    %197 = vector.extract_strided_slice %196 {offsets = [0, 0], sizes = [2, 384], strides = [1, 1]} : vector<2x512xf32> to vector<2x384xf32>
    %cst_41 = arith.constant 5.000000e-01 : f32
    %198 = vector.broadcast %cst_41 : f32 to vector<2x384xf32>
    %199 = arith.mulf %198, %197 : vector<2x384xf32>
    %cst_42 = arith.constant 5.000000e-01 : f32
    %200 = vector.broadcast %cst_42 : f32 to vector<2x384xf32>
    %201 = arith.addf %199, %200 : vector<2x384xf32>
    %202 = vector.extract_strided_slice %196 {offsets = [0, 384], sizes = [2, 128], strides = [1, 1]} : vector<2x512xf32> to vector<2x128xf32>
    %203 = vector.extract_strided_slice %201 {offsets = [0, 128], sizes = [2, 128], strides = [1, 1]} : vector<2x384xf32> to vector<2x128xf32>
    %204 = arith.mulf %203, %188 : vector<2x128xf32>
    %205 = vector.extract_strided_slice %201 {offsets = [0, 0], sizes = [2, 128], strides = [1, 1]} : vector<2x384xf32> to vector<2x128xf32>
    %206 = arith.mulf %205, %202 : vector<2x128xf32>
    %207 = arith.addf %204, %206 : vector<2x128xf32>
    %208 = vector.extract_strided_slice %201 {offsets = [0, 256], sizes = [2, 128], strides = [1, 1]} : vector<2x384xf32> to vector<2x128xf32>
    %209 = math.tanh %207 : vector<2x128xf32>
    %210 = arith.mulf %208, %209 : vector<2x128xf32>
    %211 = vector.extract_strided_slice %170 {offsets = [4, 0], sizes = [2, 512], strides = [1, 1]} : vector<16x512xf32> to vector<2x512xf32>
    %212 = arith.truncf %210 : vector<2x128xf32> to vector<2x128xbf16>
    %cst_43 = arith.constant dense<0.000000e+00> : vector<2x512xf32>
    %213 = tpu.matmul %212, %165, %cst_43 {dimension_numbers = #tpu.dot_dimension_numbers<[1], [0], [0], [1], [0, 0, 1, 1], [], []>} : vector<2x128xbf16>, vector<128x512xbf16>, vector<2x512xf32> -> vector<2x512xf32>
    %214 = arith.addf %211, %213 : vector<2x512xf32>
    %215 = math.tanh %214 : vector<2x512xf32>
    %216 = vector.extract_strided_slice %215 {offsets = [0, 0], sizes = [2, 384], strides = [1, 1]} : vector<2x512xf32> to vector<2x384xf32>
    %cst_44 = arith.constant 5.000000e-01 : f32
    %217 = vector.broadcast %cst_44 : f32 to vector<2x384xf32>
    %218 = arith.mulf %217, %216 : vector<2x384xf32>
    %cst_45 = arith.constant 5.000000e-01 : f32
    %219 = vector.broadcast %cst_45 : f32 to vector<2x384xf32>
    %220 = arith.addf %218, %219 : vector<2x384xf32>
    %221 = vector.extract_strided_slice %215 {offsets = [0, 384], sizes = [2, 128], strides = [1, 1]} : vector<2x512xf32> to vector<2x128xf32>
    %222 = vector.extract_strided_slice %220 {offsets = [0, 128], sizes = [2, 128], strides = [1, 1]} : vector<2x384xf32> to vector<2x128xf32>
    %223 = arith.mulf %222, %207 : vector<2x128xf32>
    %224 = vector.extract_strided_slice %220 {offsets = [0, 0], sizes = [2, 128], strides = [1, 1]} : vector<2x384xf32> to vector<2x128xf32>
    %225 = arith.mulf %224, %221 : vector<2x128xf32>
    %226 = arith.addf %223, %225 : vector<2x128xf32>
    %227 = vector.extract_strided_slice %220 {offsets = [0, 256], sizes = [2, 128], strides = [1, 1]} : vector<2x384xf32> to vector<2x128xf32>
    %228 = math.tanh %226 : vector<2x128xf32>
    %229 = arith.mulf %227, %228 : vector<2x128xf32>
    %230 = vector.extract_strided_slice %170 {offsets = [6, 0], sizes = [2, 512], strides = [1, 1]} : vector<16x512xf32> to vector<2x512xf32>
    %231 = arith.truncf %229 : vector<2x128xf32> to vector<2x128xbf16>
    %cst_46 = arith.constant dense<0.000000e+00> : vector<2x512xf32>
    %232 = tpu.matmul %231, %165, %cst_46 {dimension_numbers = #tpu.dot_dimension_numbers<[1], [0], [0], [1], [0, 0, 1, 1], [], []>} : vector<2x128xbf16>, vector<128x512xbf16>, vector<2x512xf32> -> vector<2x512xf32>
    %233 = arith.addf %230, %232 : vector<2x512xf32>
    %234 = math.tanh %233 : vector<2x512xf32>
    %235 = vector.extract_strided_slice %234 {offsets = [0, 0], sizes = [2, 384], strides = [1, 1]} : vector<2x512xf32> to vector<2x384xf32>
    %cst_47 = arith.constant 5.000000e-01 : f32
    %236 = vector.broadcast %cst_47 : f32 to vector<2x384xf32>
    %237 = arith.mulf %236, %235 : vector<2x384xf32>
    %cst_48 = arith.constant 5.000000e-01 : f32
    %238 = vector.broadcast %cst_48 : f32 to vector<2x384xf32>
    %239 = arith.addf %237, %238 : vector<2x384xf32>
    %240 = vector.extract_strided_slice %234 {offsets = [0, 384], sizes = [2, 128], strides = [1, 1]} : vector<2x512xf32> to vector<2x128xf32>
    %241 = vector.extract_strided_slice %239 {offsets = [0, 128], sizes = [2, 128], strides = [1, 1]} : vector<2x384xf32> to vector<2x128xf32>
    %242 = arith.mulf %241, %226 : vector<2x128xf32>
    %243 = vector.extract_strided_slice %239 {offsets = [0, 0], sizes = [2, 128], strides = [1, 1]} : vector<2x384xf32> to vector<2x128xf32>
    %244 = arith.mulf %243, %240 : vector<2x128xf32>
    %245 = arith.addf %242, %244 : vector<2x128xf32>
    %246 = vector.extract_strided_slice %239 {offsets = [0, 256], sizes = [2, 128], strides = [1, 1]} : vector<2x384xf32> to vector<2x128xf32>
    %247 = math.tanh %245 : vector<2x128xf32>
    %248 = arith.mulf %246, %247 : vector<2x128xf32>
    %249 = vector.extract_strided_slice %170 {offsets = [8, 0], sizes = [2, 512], strides = [1, 1]} : vector<16x512xf32> to vector<2x512xf32>
    %250 = arith.truncf %248 : vector<2x128xf32> to vector<2x128xbf16>
    %cst_49 = arith.constant dense<0.000000e+00> : vector<2x512xf32>
    %251 = tpu.matmul %250, %165, %cst_49 {dimension_numbers = #tpu.dot_dimension_numbers<[1], [0], [0], [1], [0, 0, 1, 1], [], []>} : vector<2x128xbf16>, vector<128x512xbf16>, vector<2x512xf32> -> vector<2x512xf32>
    %252 = arith.addf %249, %251 : vector<2x512xf32>
    %253 = math.tanh %252 : vector<2x512xf32>
    %254 = vector.extract_strided_slice %253 {offsets = [0, 0], sizes = [2, 384], strides = [1, 1]} : vector<2x512xf32> to vector<2x384xf32>
    %cst_50 = arith.constant 5.000000e-01 : f32
    %255 = vector.broadcast %cst_50 : f32 to vector<2x384xf32>
    %256 = arith.mulf %255, %254 : vector<2x384xf32>
    %cst_51 = arith.constant 5.000000e-01 : f32
    %257 = vector.broadcast %cst_51 : f32 to vector<2x384xf32>
    %258 = arith.addf %256, %257 : vector<2x384xf32>
    %259 = vector.extract_strided_slice %253 {offsets = [0, 384], sizes = [2, 128], strides = [1, 1]} : vector<2x512xf32> to vector<2x128xf32>
    %260 = vector.extract_strided_slice %258 {offsets = [0, 128], sizes = [2, 128], strides = [1, 1]} : vector<2x384xf32> to vector<2x128xf32>
    %261 = arith.mulf %260, %245 : vector<2x128xf32>
    %262 = vector.extract_strided_slice %258 {offsets = [0, 0], sizes = [2, 128], strides = [1, 1]} : vector<2x384xf32> to vector<2x128xf32>
    %263 = arith.mulf %262, %259 : vector<2x128xf32>
    %264 = arith.addf %261, %263 : vector<2x128xf32>
    %265 = vector.extract_strided_slice %258 {offsets = [0, 256], sizes = [2, 128], strides = [1, 1]} : vector<2x384xf32> to vector<2x128xf32>
    %266 = math.tanh %264 : vector<2x128xf32>
    %267 = arith.mulf %265, %266 : vector<2x128xf32>
    %268 = vector.extract_strided_slice %170 {offsets = [10, 0], sizes = [2, 512], strides = [1, 1]} : vector<16x512xf32> to vector<2x512xf32>
    %269 = arith.truncf %267 : vector<2x128xf32> to vector<2x128xbf16>
    %cst_52 = arith.constant dense<0.000000e+00> : vector<2x512xf32>
    %270 = tpu.matmul %269, %165, %cst_52 {dimension_numbers = #tpu.dot_dimension_numbers<[1], [0], [0], [1], [0, 0, 1, 1], [], []>} : vector<2x128xbf16>, vector<128x512xbf16>, vector<2x512xf32> -> vector<2x512xf32>
    %271 = arith.addf %268, %270 : vector<2x512xf32>
    %272 = math.tanh %271 : vector<2x512xf32>
    %273 = vector.extract_strided_slice %272 {offsets = [0, 0], sizes = [2, 384], strides = [1, 1]} : vector<2x512xf32> to vector<2x384xf32>
    %cst_53 = arith.constant 5.000000e-01 : f32
    %274 = vector.broadcast %cst_53 : f32 to vector<2x384xf32>
    %275 = arith.mulf %274, %273 : vector<2x384xf32>
    %cst_54 = arith.constant 5.000000e-01 : f32
    %276 = vector.broadcast %cst_54 : f32 to vector<2x384xf32>
    %277 = arith.addf %275, %276 : vector<2x384xf32>
    %278 = vector.extract_strided_slice %272 {offsets = [0, 384], sizes = [2, 128], strides = [1, 1]} : vector<2x512xf32> to vector<2x128xf32>
    %279 = vector.extract_strided_slice %277 {offsets = [0, 128], sizes = [2, 128], strides = [1, 1]} : vector<2x384xf32> to vector<2x128xf32>
    %280 = arith.mulf %279, %264 : vector<2x128xf32>
    %281 = vector.extract_strided_slice %277 {offsets = [0, 0], sizes = [2, 128], strides = [1, 1]} : vector<2x384xf32> to vector<2x128xf32>
    %282 = arith.mulf %281, %278 : vector<2x128xf32>
    %283 = arith.addf %280, %282 : vector<2x128xf32>
    %284 = vector.extract_strided_slice %277 {offsets = [0, 256], sizes = [2, 128], strides = [1, 1]} : vector<2x384xf32> to vector<2x128xf32>
    %285 = math.tanh %283 : vector<2x128xf32>
    %286 = arith.mulf %284, %285 : vector<2x128xf32>
    %287 = vector.extract_strided_slice %170 {offsets = [12, 0], sizes = [2, 512], strides = [1, 1]} : vector<16x512xf32> to vector<2x512xf32>
    %288 = arith.truncf %286 : vector<2x128xf32> to vector<2x128xbf16>
    %cst_55 = arith.constant dense<0.000000e+00> : vector<2x512xf32>
    %289 = tpu.matmul %288, %165, %cst_55 {dimension_numbers = #tpu.dot_dimension_numbers<[1], [0], [0], [1], [0, 0, 1, 1], [], []>} : vector<2x128xbf16>, vector<128x512xbf16>, vector<2x512xf32> -> vector<2x512xf32>
    %290 = arith.addf %287, %289 : vector<2x512xf32>
    %291 = math.tanh %290 : vector<2x512xf32>
    %292 = vector.extract_strided_slice %291 {offsets = [0, 0], sizes = [2, 384], strides = [1, 1]} : vector<2x512xf32> to vector<2x384xf32>
    %cst_56 = arith.constant 5.000000e-01 : f32
    %293 = vector.broadcast %cst_56 : f32 to vector<2x384xf32>
    %294 = arith.mulf %293, %292 : vector<2x384xf32>
    %cst_57 = arith.constant 5.000000e-01 : f32
    %295 = vector.broadcast %cst_57 : f32 to vector<2x384xf32>
    %296 = arith.addf %294, %295 : vector<2x384xf32>
    %297 = vector.extract_strided_slice %291 {offsets = [0, 384], sizes = [2, 128], strides = [1, 1]} : vector<2x512xf32> to vector<2x128xf32>
    %298 = vector.extract_strided_slice %296 {offsets = [0, 128], sizes = [2, 128], strides = [1, 1]} : vector<2x384xf32> to vector<2x128xf32>
    %299 = arith.mulf %298, %283 : vector<2x128xf32>
    %300 = vector.extract_strided_slice %296 {offsets = [0, 0], sizes = [2, 128], strides = [1, 1]} : vector<2x384xf32> to vector<2x128xf32>
    %301 = arith.mulf %300, %297 : vector<2x128xf32>
    %302 = arith.addf %299, %301 : vector<2x128xf32>
    %303 = vector.extract_strided_slice %296 {offsets = [0, 256], sizes = [2, 128], strides = [1, 1]} : vector<2x384xf32> to vector<2x128xf32>
    %304 = math.tanh %302 : vector<2x128xf32>
    %305 = arith.mulf %303, %304 : vector<2x128xf32>
    %306 = vector.extract_strided_slice %170 {offsets = [14, 0], sizes = [2, 512], strides = [1, 1]} : vector<16x512xf32> to vector<2x512xf32>
    %307 = arith.truncf %305 : vector<2x128xf32> to vector<2x128xbf16>
    %cst_58 = arith.constant dense<0.000000e+00> : vector<2x512xf32>
    %308 = tpu.matmul %307, %165, %cst_58 {dimension_numbers = #tpu.dot_dimension_numbers<[1], [0], [0], [1], [0, 0, 1, 1], [], []>} : vector<2x128xbf16>, vector<128x512xbf16>, vector<2x512xf32> -> vector<2x512xf32>
    %309 = arith.addf %306, %308 : vector<2x512xf32>
    %310 = math.tanh %309 : vector<2x512xf32>
    %311 = vector.extract_strided_slice %310 {offsets = [0, 0], sizes = [2, 384], strides = [1, 1]} : vector<2x512xf32> to vector<2x384xf32>
    %cst_59 = arith.constant 5.000000e-01 : f32
    %312 = vector.broadcast %cst_59 : f32 to vector<2x384xf32>
    %313 = arith.mulf %312, %311 : vector<2x384xf32>
    %cst_60 = arith.constant 5.000000e-01 : f32
    %314 = vector.broadcast %cst_60 : f32 to vector<2x384xf32>
    %315 = arith.addf %313, %314 : vector<2x384xf32>
    %316 = vector.extract_strided_slice %310 {offsets = [0, 384], sizes = [2, 128], strides = [1, 1]} : vector<2x512xf32> to vector<2x128xf32>
    %317 = vector.extract_strided_slice %315 {offsets = [0, 128], sizes = [2, 128], strides = [1, 1]} : vector<2x384xf32> to vector<2x128xf32>
    %318 = arith.mulf %317, %302 : vector<2x128xf32>
    %319 = vector.extract_strided_slice %315 {offsets = [0, 0], sizes = [2, 128], strides = [1, 1]} : vector<2x384xf32> to vector<2x128xf32>
    %320 = arith.mulf %319, %316 : vector<2x128xf32>
    %321 = arith.addf %318, %320 : vector<2x128xf32>
    %322 = vector.extract_strided_slice %315 {offsets = [0, 256], sizes = [2, 128], strides = [1, 1]} : vector<2x384xf32> to vector<2x128xf32>
    %323 = math.tanh %321 : vector<2x128xf32>
    %324 = arith.mulf %322, %323 : vector<2x128xf32>
    %c416 = arith.constant 416 : index
    %c0_61 = arith.constant 0 : index
    %325 = vector.load %arg1[%c416, %c0_61] : memref<544x512xbf16, #tpu.memory_space<vmem>>, vector<128x128xbf16>
    %c402 = arith.constant 402 : index
    %c0_62 = arith.constant 0 : index
    %326 = vector.load %arg1[%c402, %c0_62] : memref<544x512xbf16, #tpu.memory_space<vmem>>, vector<1x128xbf16>
    %327 = arith.extf %326 : vector<1x128xbf16> to vector<1x128xf32>
    %328 = arith.truncf %324 : vector<2x128xf32> to vector<2x128xbf16>
    %cst_63 = arith.constant dense<0.000000e+00> : vector<2x128xf32>
    %329 = tpu.matmul %328, %325, %cst_63 {dimension_numbers = #tpu.dot_dimension_numbers<[1], [0], [0], [1], [0, 0, 1, 1], [], []>} : vector<2x128xbf16>, vector<128x128xbf16>, vector<2x128xf32> -> vector<2x128xf32>
    %330 = vector.broadcast %327 : vector<1x128xf32> to vector<2x128xf32>
    %331 = arith.addf %329, %330 : vector<2x128xf32>
    %c0_64 = arith.constant 0 : index
    %c0_65 = arith.constant 0 : index
    %332 = vector.load %arg2[%c0_64, %c0_65] : memref<2x128xf32, #tpu.memory_space<vmem>>, vector<2x128xf32>
    tpu.vector_store %arg2[%c0_64, %c0_65], %331 {strides = array<i32>} : memref<2x128xf32, #tpu.memory_space<vmem>>, vector<2x128xf32>,
    return
  }
}

</mosaic_0001>

<bundles_post_ra>
// kernel: tpu_custom_call.1
= control target key start
LH: loop header
LB: loop body
LE: loop exit
PB: predicated region body
PF: predicated region fallthrough
CT: control target
= control target key end

     0   :  { %7 = vsyncpa [#allocation3], 0  ;;  %s4397_s0 = inlined_call_operand.hbm [shape: bf16[16,16], index: 0, kind: input, shape index: {}]   ;;  %s4398_s1 = inlined_call_operand.hbm [shape: bf16[544,512], index: 1, kind: input, shape index: {}]   ;;  %s4399_s2 = inlined_call_operand.hbm [shape: f32[2,128], index: 2, kind: output, shape index: {}]  }
   0x1   :  { %8 = vsyncpa [#allocation6], 0 }
   0x2   :  { %9 = vsyncpa [#allocation4], 0  ;;  %s3436_s9 = smov [#allocation2]  }
   0x3   :  { %s15_s10 = sshll.u32 %s3436_s9, 4  ;;  %s16_s10 = int_to_ptr.vmem [resolvable:$true] %s15_s10 }
   0x4   :  { %s3378_s11 = scalar_lea.vmem %s16_s10, 128  ;;  %p3383_p1 = scmp.lt.s32.totalorder %s16_s10, %s16_s10 }
   0x5   :  { %p3379_p0 = scmp.ne.s32.totalorder %s16_s10, %s3378_s11  ;;  %p3384_p2 = scmp.lt.s32.totalorder %s3378_s11, %s3378_s11 }
   0x7   :  { %p3385_p3 = por %p3384_p2, %p3383_p1 }
   0x9   :  { %p3386_p4 = pnand %p3385_p3, %p3379_p0 }
   0xb   :  { %3389 = shalt.err (!%p3386_p4)
}
   0xc   :  { %s3437_s12 = smov 64   ;;  %s3438_s13 = smov 4  }
   0xd   :  { %21 = dma.hbm_to_vmem [thread:$0]  %s4397_s0, 128, %s16_s10, [#allocation3], %s3437_s12, %s3437_s12, %s3438_s13  }
   0xe   :  { %s3439_s16 = smov [#allocation5]  }
   0xf   :  { %s27_s17 = sshll.u32 %s3439_s16, 4  ;;  %s28_s17 = int_to_ptr.vmem [resolvable:$true] %s27_s17 }
  0x10   :  { %s3398_s18 = scalar_lea.vmem %s28_s17, 17408  ;;  %p3403_p6 = scmp.lt.s32.totalorder %s28_s17, %s28_s17 }
  0x11   :  { %p3399_p5 = scmp.ne.s32.totalorder %s28_s17, %s3398_s18  ;;  %p3404_p7 = scmp.lt.s32.totalorder %s3398_s18, %s3398_s18 }
  0x13   :  { %p3405_p8 = por %p3404_p7, %p3403_p6 }
  0x15   :  { %p3406_p9 = pnand %p3405_p8, %p3399_p5 }
  0x17   :  { %3409 = shalt.err (!%p3406_p9)
}
  0x18   :  { %s3440_s19 = smov 256   ;;  %s3441_s20 = smov 16  }
  0x19   :  { %33 = dma.hbm_to_vmem [thread:$0]  %s4398_s1, 17408, %s28_s17, [#allocation6], %s3440_s19, %s3440_s19, %s3441_s20  }
  0x1a   :  { %3430 = dma.done.wait [#allocation3], 128  }
  0x1b   :  { %3431 = vsyncadd [#allocation3], 4294967168 }
  0x1c   :  { %3432 = dma.done.wait [#allocation6], 17408  }
  0x1d   :  { %3433 = vsyncadd [#allocation6], 4294949888  ;;  %v4404_v0 = vmov 0   ;;  %v2999_v1 = vld [vmem:[#allocation5 + $0x4] ss:$16 sps:$4 sm:$0xff]   ;;  %v3005_v5 = vld [vmem:[#allocation2] sm:$0xff]   ;;  %v85_v38 = vlaneseq }
  0x1e   :  { %162 = vmatprep.mubr.bf16.mxu1 %v4404_v0  ;;  %408 = vmatprep.mubr.bf16.mxu0 %v4404_v0  ;;  %v3469_v2 = vld [vmem:[#allocation5 + $0x204] ss:$16 sps:$4 sm:$0xff]   ;;  %v3003_v3 = vld [vmem:[#allocation5] ss:$16 sps:$4 sm:$0xff]   ;;  %vm126_vm0 = vcmask 130048   ;;  %vm1299_vm1 = vcmask 1041408  }
  0x1f   :  { %144 = vmatprep.subr.bf16.mxu1 %v2999_v1  ;;  %v3471_v4 = vld [vmem:[#allocation5 + $0x200] ss:$16 sps:$4 sm:$0xff]   ;;  %376 = vmatprep.subr.bf16.mxu0 %v3469_v2  ;;  %v3006_v6 = vld [vmem:[#allocation5 + $0x8] ss:$16 sps:$4 sm:$0xff]   ;;  %v3008_v7 = vld [vmem:[#allocation5 + $0xc] ss:$16 sps:$4 sm:$0xff]  }
  0x20   :  { %145 = vmatpush1.bf16.msra.mxu1 %v3003_v3  ;;  %377 = vmatpush1.bf16.msra.mxu0 %v3471_v4  ;;  %v3475_v8 = vld [vmem:[#allocation5 + $0x1e4] ss:$16 sps:$4 sm:$0xff]   ;;  %v3477_v9 = vld [vmem:[#allocation5 + $0x1e0] ss:$16 sps:$4 sm:$0xff]   ;;  %v3486_v12 = vld [vmem:[#allocation5 + $0x20c] ss:$16 sps:$4 sm:$0xff]  }
  0x21   :  { %187 = vmatprep.subr.bf16.mxu1 %v3008_v7  ;;  %378 = vmatprep.subr.bf16.mxu0 %v3475_v8  ;;  %v3481_v10 = vld [vmem:[#allocation5 + $0x1c4] ss:$16 sps:$4 sm:$0xff]   ;;  %v3483_v11 = vld [vmem:[#allocation5 + $0x1c0] ss:$16 sps:$4 sm:$0xff]   ;;  %v3494_v14 = vld [vmem:[#allocation5 + $0x208] ss:$16 sps:$4 sm:$0xff]  }
  0x22   :  { %v3490_v13 = vld [vmem:[#allocation5 + $0x1a4] ss:$16 sps:$4 sm:$0xff]   ;;  %v3496_v15 = vld [vmem:[#allocation5 + $0x1a0] ss:$16 sps:$4 sm:$0xff]   ;;  %v3498_v16 = vld [vmem:[#allocation5 + $0x1ec] ss:$16 sps:$4 sm:$0xff]  }
  0x23   :  { %2854 = vmatmul.mubr.msk.bf16.vlgmr.msra.gmra.mxu1 %vm126_vm0, %v3005_v5  ;;  %v3501_v17 = vld [vmem:[#allocation5 + $0x184] ss:$16 sps:$4 sm:$0xff]   ;;  %v3504_v18 = vld [vmem:[#allocation5 + $0x1e8] ss:$16 sps:$4 sm:$0xff]   ;;  %v3508_v19 = vld [vmem:[#allocation5 + $0x180] ss:$16 sps:$4 sm:$0xff]  }
  0x24   :  { %188 = vmatpush1.bf16.msra.mxu1 %v3006_v6  ;;  %379 = vmatpush1.bf16.msra.mxu0 %v3477_v9  ;;  %v3512_v20 = vld [vmem:[#allocation5 + $0x1cc] ss:$16 sps:$4 sm:$0xff]   ;;  %v3514_v21 = vld [vmem:[#allocation5 + $0x164] ss:$16 sps:$4 sm:$0xff]   ;;  %v3519_v22 = vld [vmem:[#allocation5 + $0x1c8] ss:$16 sps:$4 sm:$0xff]  }
  0x25   :  { %380 = vmatprep.subr.bf16.mxu0 %v3481_v10  ;;  %205 = vmatprep.mubr.bf16.mxu1 %v4404_v0  ;;  %v3521_v23 = vld [vmem:[#allocation5 + $0x160] ss:$16 sps:$4 sm:$0xff]   ;;  %v3523_v24 = vld [vmem:[#allocation5 + $0x1ac] ss:$16 sps:$4 sm:$0xff]   ;;  %v3527_v25 = vld [vmem:[#allocation5 + $0x144] ss:$16 sps:$4 sm:$0xff]  }
  0x26   :  { %417 = vmatprep.subr.bf16.mxu1 %v3486_v12  ;;  %v3529_v26 = vld [vmem:[#allocation5 + $0x1a8] ss:$16 sps:$4 sm:$0xff]   ;;  %v3533_v27 = vld [vmem:[#allocation5 + $0x140] ss:$16 sps:$4 sm:$0xff]   ;;  %v3535_v28 = vld [vmem:[#allocation5 + $0x18c] ss:$16 sps:$4 sm:$0xff]  }
  0x27   :  { %v3539_v29 = vld [vmem:[#allocation5 + $0x124] ss:$16 sps:$4 sm:$0xff]   ;;  %v3541_v30 = vld [vmem:[#allocation5 + $0x188] ss:$16 sps:$4 sm:$0xff]   ;;  %v3543_v31 = vld [vmem:[#allocation5 + $0x120] ss:$16 sps:$4 sm:$0xff]  }
  0x28   :  { %381 = vmatpush1.bf16.msra.mxu0 %v3483_v11  ;;  %v3545_v32 = vld [vmem:[#allocation5 + $0x16c] ss:$16 sps:$4 sm:$0xff]   ;;  %v3551_v33 = vld [vmem:[#allocation5 + $0x168] ss:$16 sps:$4 sm:$0xff]   ;;  %v3607_v39 = vshrl.u32 %v85_v38, 7  ;;  %vm1301_vm2 = vcmask 1043456  }
  0x29   :  { %382 = vmatprep.subr.bf16.mxu0 %v3490_v13  ;;  %v3553_v34 = vld [vmem:[#allocation5 + $0x14c] ss:$16 sps:$4 sm:$0xff]   ;;  %v3559_v35 = vld [vmem:[#allocation5 + $0x148] ss:$16 sps:$4 sm:$0xff]   ;;  %v3609_v40 = vld [vmem:[#allocation5 + $0x320] sm:$0x11] }
  0x2a   :  { %v3562_v36 = vld [vmem:[#allocation5 + $0x12c] ss:$16 sps:$4 sm:$0xff]   ;;  %v3568_v37 = vld [vmem:[#allocation5 + $0x128] ss:$16 sps:$4 sm:$0xff]   ;;  %v4403_v41 = vunpack.c.l.bf16 %v3609_v40  ;;  %v87_v42 = vsub.s32 0, %v3607_v39  ;;  %v4401_v44 = vunpack.c.h.bf16 %v3609_v40  ;;  %vm1303_vm3 = vcmask 1045504  }
  0x2b   :  { %2855 = vmatmul.mubr.msk.bf16.vlgmr.msra.gmra.mxu1 %vm126_vm0, %v3005_v5  ;;  %v3616_v48 = vld [vmem:[#allocation5 + $0x328] sm:$0x11]  ;;  %vm3444_vm4 = vmmov 0   ;;  %s3445_s0 = smov [#allocation7]  }
  0x2c   :  { %418 = vmatpush1.bf16.msra.mxu1 %v3494_v14  ;;  %383 = vmatpush1.bf16.msra.mxu0 %v3496_v15  ;;  %v88_v46 = vrot.slane %v4403_v41, %v87_v42  ;;  %v92_v49 = vrot.slane %v4401_v44, %v87_v42  ;;  %v4402_v53 = vunpack.c.l.bf16 %v3616_v48  ;;  %v4400_v55 = vunpack.c.h.bf16 %v3616_v48  ;;  %s2839_s1 = sshll.u32 %s3445_s0, 4  ;;  %s2840_s1 = int_to_ptr.vmem [resolvable:$true] %s2839_s1 }
  0x2d   :  { %419 = vmatprep.subr.bf16.mxu1 %v3498_v16  ;;  %384 = vmatprep.subr.bf16.mxu0 %v3501_v17  ;;  %s3410_s23 = scalar_lea.vmem %s2840_s1, 32  ;;  %p3415_p11 = scmp.lt.s32.totalorder %s2840_s1, %s2840_s1 }
  0x2e   :  { %449 = vmatprep.mubr.bf16.mxu1 %v4404_v0  ;;  %v96_v57 = vrot.slane %v4402_v53, %v87_v42  ;;  %v100_v59 = vrot.slane %v4400_v55, %v87_v42  ;;  %p3411_p10 = scmp.ne.s32.totalorder %s2840_s1, %s3410_s23  ;;  %p3416_p12 = scmp.lt.s32.totalorder %s3410_s23, %s3410_s23 }
  0x30   :  { %420 = vmatpush1.bf16.msra.mxu1 %v3504_v18  ;;  %385 = vmatpush1.bf16.msra.mxu0 %v3508_v19  ;;  %p3417_p13 = por %p3416_p12, %p3415_p11 }
  0x31   :  { %421 = vmatprep.subr.bf16.mxu1 %v3512_v20  ;;  %386 = vmatprep.subr.bf16.mxu0 %v3514_v21 }
  0x32   :  { %p3418_p0 = pnand %p3417_p13, %p3411_p10 }
  0x34   :  { %422 = vmatpush1.bf16.msra.mxu1 %v3519_v22  ;;  %387 = vmatpush1.bf16.msra.mxu0 %v3521_v23 }
  0x35   :  { %423 = vmatprep.subr.bf16.mxu1 %v3523_v24  ;;  %388 = vmatprep.subr.bf16.mxu0 %v3527_v25 }
  0x38   :  { %424 = vmatpush1.bf16.msra.mxu1 %v3529_v26  ;;  %389 = vmatpush1.bf16.msra.mxu0 %v3533_v27 }
  0x39   :  { %425 = vmatprep.subr.bf16.mxu1 %v3535_v28  ;;  %390 = vmatprep.subr.bf16.mxu0 %v3539_v29 }
  0x3c   :  { %426 = vmatpush1.bf16.msra.mxu1 %v3541_v30  ;;  %391 = vmatpush1.bf16.msra.mxu0 %v3543_v31 }
  0x3d   :  { %427 = vmatprep.subr.bf16.mxu1 %v3545_v32  ;;  %478 = vmatprep.subr.bf16.mxu0 %v3469_v2 }
  0x3f   :  { %409 = vmatmul.mubr.bf16.vlgmr.msra.gmra.mxu0 %v4404_v0 }
  0x40   :  { %428 = vmatpush1.bf16.msra.mxu1 %v3551_v33  ;;  %479 = vmatpush1.bf16.msra.mxu0 %v3471_v4 }
  0x41   :  { %429 = vmatprep.subr.bf16.mxu1 %v3553_v34  ;;  %480 = vmatprep.subr.bf16.mxu0 %v3475_v8 }
  0x42   :  { %510 = vmatprep.mubr.bf16.mxu0 %v4404_v0 }
  0x44   :  { %430 = vmatpush1.bf16.msra.mxu1 %v3559_v35  ;;  %481 = vmatpush1.bf16.msra.mxu0 %v3477_v9 }
  0x45   :  { %431 = vmatprep.subr.bf16.mxu1 %v3562_v36  ;;  %482 = vmatprep.subr.bf16.mxu0 %v3481_v10 }
  0x48   :  { %432 = vmatpush1.bf16.msra.mxu1 %v3568_v37  ;;  %483 = vmatpush1.bf16.msra.mxu0 %v3483_v11 }
  0x49   :  { %519 = vmatprep.subr.bf16.mxu1 %v3486_v12  ;;  %484 = vmatprep.subr.bf16.mxu0 %v3490_v13 }
  0x4b   :  { %450 = vmatmul.mubr.bf16.vlgmr.msra.gmra.mxu1 %v4404_v0 }
  0x4c   :  { %520 = vmatpush1.bf16.msra.mxu1 %v3494_v14  ;;  %485 = vmatpush1.bf16.msra.mxu0 %v3496_v15 }
  0x4d   :  { %521 = vmatprep.subr.bf16.mxu1 %v3498_v16  ;;  %486 = vmatprep.subr.bf16.mxu0 %v3501_v17 }
  0x4e   :  { %551 = vmatprep.mubr.bf16.mxu1 %v4404_v0 }
  0x50   :  { %522 = vmatpush1.bf16.msra.mxu1 %v3504_v18  ;;  %487 = vmatpush1.bf16.msra.mxu0 %v3508_v19 }
  0x51   :  { %523 = vmatprep.subr.bf16.mxu1 %v3512_v20  ;;  %488 = vmatprep.subr.bf16.mxu0 %v3514_v21 }
  0x54   :  { %524 = vmatpush1.bf16.msra.mxu1 %v3519_v22  ;;  %489 = vmatpush1.bf16.msra.mxu0 %v3521_v23 }
  0x55   :  { %525 = vmatprep.subr.bf16.mxu1 %v3523_v24  ;;  %490 = vmatprep.subr.bf16.mxu0 %v3527_v25 }
  0x58   :  { %526 = vmatpush1.bf16.msra.mxu1 %v3529_v26  ;;  %491 = vmatpush1.bf16.msra.mxu0 %v3533_v27 }
  0x59   :  { %527 = vmatprep.subr.bf16.mxu1 %v3535_v28  ;;  %492 = vmatprep.subr.bf16.mxu0 %v3539_v29 }
  0x5c   :  { %528 = vmatpush1.bf16.msra.mxu1 %v3541_v30  ;;  %493 = vmatpush1.bf16.msra.mxu0 %v3543_v31 }
  0x5d   :  { %529 = vmatprep.subr.bf16.mxu1 %v3545_v32  ;;  %598 = vmatprep.subr.bf16.mxu0 %v3469_v2 }
  0x60   :  { %530 = vmatpush1.bf16.msra.mxu1 %v3551_v33 }
  0x61   :  { %531 = vmatprep.subr.bf16.mxu1 %v3553_v34 }
  0x64   :  { %532 = vmatpush1.bf16.msra.mxu1 %v3559_v35 }
  0x65   :  { %533 = vmatprep.subr.bf16.mxu1 %v3562_v36 }
  0x68   :  { %534 = vmatpush1.bf16.msra.mxu1 %v3568_v37 }
  0x69   :  { %639 = vmatprep.subr.bf16.mxu1 %v3486_v12 }
  0xe3   :  { %v164_v43 = vpop.f32.mrf.mxu1 }
  0xe4   :  { %v3636_v5 = vadd.f32 %v164_v43, %v88_v46 }
  0xe5   :  { %v166_v45 = vpop.f32.mrf.mxu1 }
  0xe6   :  { %v3634_v1 = vadd.f32 %v166_v45, %v92_v49 }
  0xe7   :  { %v168_v47 = vpop.f32.mrf.mxu1 }
  0xe8   :  { %v3620_v50 = vadd.f32 %v168_v47, %v88_v46 }
  0xe9   :  { %v170_v51 = vpop.f32.mrf.mxu1 }
  0xea   :  { %v3622_v52 = vadd.f32 %v170_v51, %v92_v49 }
  0xeb   :  { %v207_v54 = vpop.f32.mrf.mxu1 }
  0xec   :  { %v3643_v43 = vadd.f32 %v207_v54, %v96_v57 }
  0xed   :  { %v209_v56 = vpop.f32.mrf.mxu1 }
  0xee   :  { %v3640_v51 = vadd.f32 %v209_v56, %v100_v59 }
  0xef   :  { %v211_v58 = vpop.f32.mrf.mxu1 }
  0xf0   :  { %v3630_v60 = vadd.f32 %v211_v58, %v96_v57 }
  0xf1   :  { %v213_v61 = vpop.f32.mrf.mxu1 }
  0xf2   :  { %v3632_v62 = vadd.f32 %v213_v61, %v100_v59 }
  0xff   :  { %v410_v63 = vpop.f32.mrf.mxu0 }
 0x100   :  { %v458_v38 = vadd.f32 %v410_v63, %v3636_v5 }
 0x101   :  { %v412_v3 = vpop.f32.mrf.mxu0 }
 0x102   :  { %v459_v6 = vadd.f32 %v412_v3, %v3634_v1 }
 0x103   :  { %v414_v7 = vpop.f32.mrf.mxu0 }
 0x104   :  { %3158 = vtanh.f32 %v459_v6 }
 0x105   :  { %v415_v47 = vpop.f32.mrf.mxu0  ;;  %3160 = vtanh.f32 %v458_v38 }
 0x10b   :  { %v451_v42 = vpop.f32.mrf.mxu1 }
 0x10c   :  { %v460_v7 = vadd.f32 %v451_v42, %v3643_v43 }
 0x10d   :  { %v453_v58 = vpop.f32.mrf.mxu1 }
 0x10e   :  { %v461_v61 = vadd.f32 %v453_v58, %v3640_v51 }
 0x10f   :  { %v455_v55 = vpop.f32.mrf.mxu1 }
 0x110   :  { %3162 = vtanh.f32 %v461_v61 }
 0x111   :  { %v456_v45 = vpop.f32.mrf.mxu1  ;;  %v3159_v49 = vpop.eup %3158  ;;  %3164 = vtanh.f32 %v460_v7 }
 0x112   :  { %v3161_v46 = vpop.eup %3160  ;;  %v467_v3 = vmul.f32 0.5, %v3159_v49 }
 0x113   :  { %v466_v63 = vmul.f32 0.5, %v3161_v46 }
 0x114   :  { %v470_v47 = vadd.f32 0.5, %v467_v3 }
 0x115   :  { %v469_v6 = vadd.f32 0.5, %v466_v63 }
 0x116   :  { %v472_v56 = vmul.f32 0.0, %v470_v47 }
 0x11d   :  { %v3163_v38 = vpop.eup %3162 }
 0x11e   :  { %v473_v59 = vmul.f32 %v3163_v38, %v469_v6  ;;  %v3165_v55 = vpop.eup %3164 }
 0x11f   :  { %v468_v58 = vmul.f32 0.5, %v3165_v55 }
 0x120   :  { %v3646_v44 = vadd.f32 %v473_v59, %v472_v56 }
 0x121   :  { %v471_v61 = vadd.f32 0.5, %v468_v58 }
 0x122   :  { %3166 = vtanh.f32 %v3646_v44 }
 0x12f   :  { %v3167_v54 = vpop.eup %3166 }
 0x130   :  { %v3649_v57 = vmul.f32 %v3167_v54, %v471_v61 }
 0x132   :  { %v477_v42 = vpack.c.bf16 %v3649_v57, %v3649_v57 }
 0x134   :  { %511 = vmatmul.mubr.bf16.vlgmr.msra.gmra.mxu0 %v477_v42  ;;  %552 = vmatmul.mubr.bf16.vlgmr.msra.gmra.mxu1 %v477_v42 }
 0x135   :  { %599 = vmatpush1.bf16.msra.mxu0 %v3471_v4  ;;  %640 = vmatpush1.bf16.msra.mxu1 %v3494_v14 }
 0x136   :  { %600 = vmatprep.subr.bf16.mxu0 %v3475_v8  ;;  %641 = vmatprep.subr.bf16.mxu1 %v3498_v16 }
 0x137   :  { %630 = vmatprep.mubr.bf16.mxu0 %v4404_v0  ;;  %671 = vmatprep.mubr.bf16.mxu1 %v4404_v0 }
 0x139   :  { %601 = vmatpush1.bf16.msra.mxu0 %v3477_v9  ;;  %642 = vmatpush1.bf16.msra.mxu1 %v3504_v18 }
 0x13a   :  { %602 = vmatprep.subr.bf16.mxu0 %v3481_v10  ;;  %643 = vmatprep.subr.bf16.mxu1 %v3512_v20 }
 0x13d   :  { %603 = vmatpush1.bf16.msra.mxu0 %v3483_v11  ;;  %644 = vmatpush1.bf16.msra.mxu1 %v3519_v22 }
 0x13e   :  { %604 = vmatprep.subr.bf16.mxu0 %v3490_v13  ;;  %645 = vmatprep.subr.bf16.mxu1 %v3523_v24 }
 0x141   :  { %605 = vmatpush1.bf16.msra.mxu0 %v3496_v15  ;;  %646 = vmatpush1.bf16.msra.mxu1 %v3529_v26 }
 0x142   :  { %606 = vmatprep.subr.bf16.mxu0 %v3501_v17  ;;  %647 = vmatprep.subr.bf16.mxu1 %v3535_v28 }
 0x145   :  { %607 = vmatpush1.bf16.msra.mxu0 %v3508_v19  ;;  %648 = vmatpush1.bf16.msra.mxu1 %v3541_v30 }
 0x146   :  { %608 = vmatprep.subr.bf16.mxu0 %v3514_v21  ;;  %649 = vmatprep.subr.bf16.mxu1 %v3545_v32 }
 0x149   :  { %609 = vmatpush1.bf16.msra.mxu0 %v3521_v23  ;;  %650 = vmatpush1.bf16.msra.mxu1 %v3551_v33 }
 0x14a   :  { %610 = vmatprep.subr.bf16.mxu0 %v3527_v25  ;;  %651 = vmatprep.subr.bf16.mxu1 %v3553_v34 }
 0x14d   :  { %611 = vmatpush1.bf16.msra.mxu0 %v3533_v27  ;;  %652 = vmatpush1.bf16.msra.mxu1 %v3559_v35 }
 0x14e   :  { %612 = vmatprep.subr.bf16.mxu0 %v3539_v29  ;;  %653 = vmatprep.subr.bf16.mxu1 %v3562_v36 }
 0x151   :  { %613 = vmatpush1.bf16.msra.mxu0 %v3543_v31  ;;  %654 = vmatpush1.bf16.msra.mxu1 %v3568_v37 }
 0x152   :  { %718 = vmatprep.subr.bf16.mxu0 %v3469_v2  ;;  %759 = vmatprep.subr.bf16.mxu1 %v3486_v12 }
 0x1f4   :  { %v512_v45 = vpop.f32.mrf.mxu0  ;;  %v553_v49 = vpop.f32.mrf.mxu1 }
 0x1f5   :  { %v564_v46 = vrot.slane %v512_v45, 6  ;;  %v566_v54 = vrot.slane %v553_v49, 6 }
 0x1f6   :  { %v514_v3 = vpop.f32.mrf.mxu0  ;;  %v555_v7 = vpop.f32.mrf.mxu1 }
 0x1f7   :  { %v572_v63 = vadd.f32 %v564_v46, %v3636_v5  ;;  %v565_v47 = vrot.slane %v514_v3, 6  ;;  %v567_v6 = vrot.slane %v555_v7, 6  ;;  %v574_v42 = vadd.f32 %v566_v54, %v3643_v43 }
 0x1f8   :  { %v516_v38 = vpop.f32.mrf.mxu0  ;;  %v557_v56 = vpop.f32.mrf.mxu1 }
 0x1f9   :  { %3168 = vtanh.f32 %v572_v63  ;;  %v573_v59 = vadd.f32 %v565_v47, %v3634_v1  ;;  %v575_v61 = vadd.f32 %v567_v6, %v3640_v51  ;;  %v587_v63 = vrot.slane %v3646_v44, 6 }
 0x1fa   :  { %v517_v55 = vpop.f32.mrf.mxu0  ;;  %v558_v58 = vpop.f32.mrf.mxu1 }
 0x1fb   :  { %3170 = vtanh.f32 %v573_v59 }
 0x1fc   :  { %3172 = vtanh.f32 %v575_v61 }
 0x1fd   :  { %3174 = vtanh.f32 %v574_v42 }
 0x206   :  { %v3169_v45 = vpop.eup %3168 }
 0x207   :  { %v580_v53 = vmul.f32 0.5, %v3169_v45 }
 0x208   :  { %v3171_v41 = vpop.eup %3170 }
 0x209   :  { %v583_v46 = vadd.f32 0.5, %v580_v53  ;;  %v581_v3 = vmul.f32 0.5, %v3171_v41  ;;  %v3173_v38 = vpop.eup %3172 }
 0x20a   :  { %v3175_v6 = vpop.eup %3174 }
 0x20b   :  { %v584_v7 = vadd.f32 0.5, %v581_v3  ;;  %v590_v56 = vmul.f32 %v3173_v38, %v583_v46  ;;  %v582_v49 = vmul.f32 0.5, %v3175_v6 }
 0x20d   :  { %v589_v47 = vmul.f32 %v587_v63, %v584_v7  ;;  %v585_v59 = vadd.f32 0.5, %v582_v49 }
 0x20f   :  { %v3692_v55 = vadd.f32 %v590_v56, %v589_v47 }
 0x211   :  { %3176 = vtanh.f32 %v3692_v55 }
 0x21e   :  { %v3177_v58 = vpop.eup %3176 }
 0x21f   :  { %v3695_v61 = vmul.f32 %v3177_v58, %v585_v59 }
 0x221   :  { %v594_v53 = vpack.c.bf16 %v3695_v61, %v3695_v61 }
 0x223   :  { %v596_v41 = vrot.slane %v594_v53, 1 }
 0x225   :  { %631 = vmatmul.mubr.bf16.vlgmr.msra.gmra.mxu0 %v596_v41  ;;  %672 = vmatmul.mubr.bf16.vlgmr.msra.gmra.mxu1 %v596_v41 }
 0x226   :  { %719 = vmatpush1.bf16.msra.mxu0 %v3471_v4  ;;  %760 = vmatpush1.bf16.msra.mxu1 %v3494_v14 }
 0x227   :  { %720 = vmatprep.subr.bf16.mxu0 %v3475_v8  ;;  %761 = vmatprep.subr.bf16.mxu1 %v3498_v16 }
 0x228   :  { %750 = vmatprep.mubr.bf16.mxu0 %v4404_v0  ;;  %791 = vmatprep.mubr.bf16.mxu1 %v4404_v0 }
 0x22a   :  { %721 = vmatpush1.bf16.msra.mxu0 %v3477_v9  ;;  %762 = vmatpush1.bf16.msra.mxu1 %v3504_v18 }
 0x22b   :  { %722 = vmatprep.subr.bf16.mxu0 %v3481_v10  ;;  %763 = vmatprep.subr.bf16.mxu1 %v3512_v20 }
 0x22e   :  { %723 = vmatpush1.bf16.msra.mxu0 %v3483_v11  ;;  %764 = vmatpush1.bf16.msra.mxu1 %v3519_v22 }
 0x22f   :  { %724 = vmatprep.subr.bf16.mxu0 %v3490_v13  ;;  %765 = vmatprep.subr.bf16.mxu1 %v3523_v24 }
 0x232   :  { %725 = vmatpush1.bf16.msra.mxu0 %v3496_v15  ;;  %766 = vmatpush1.bf16.msra.mxu1 %v3529_v26 }
 0x233   :  { %726 = vmatprep.subr.bf16.mxu0 %v3501_v17  ;;  %767 = vmatprep.subr.bf16.mxu1 %v3535_v28 }
 0x236   :  { %727 = vmatpush1.bf16.msra.mxu0 %v3508_v19  ;;  %768 = vmatpush1.bf16.msra.mxu1 %v3541_v30 }
 0x237   :  { %728 = vmatprep.subr.bf16.mxu0 %v3514_v21  ;;  %769 = vmatprep.subr.bf16.mxu1 %v3545_v32 }
 0x23a   :  { %729 = vmatpush1.bf16.msra.mxu0 %v3521_v23  ;;  %770 = vmatpush1.bf16.msra.mxu1 %v3551_v33 }
 0x23b   :  { %730 = vmatprep.subr.bf16.mxu0 %v3527_v25  ;;  %771 = vmatprep.subr.bf16.mxu1 %v3553_v34 }
 0x23e   :  { %731 = vmatpush1.bf16.msra.mxu0 %v3533_v27  ;;  %772 = vmatpush1.bf16.msra.mxu1 %v3559_v35 }
 0x23f   :  { %732 = vmatprep.subr.bf16.mxu0 %v3539_v29  ;;  %773 = vmatprep.subr.bf16.mxu1 %v3562_v36 }
 0x242   :  { %733 = vmatpush1.bf16.msra.mxu0 %v3543_v31  ;;  %774 = vmatpush1.bf16.msra.mxu1 %v3568_v37 }
 0x243   :  { %838 = vmatprep.subr.bf16.mxu0 %v3469_v2  ;;  %879 = vmatprep.subr.bf16.mxu1 %v3486_v12 }
 0x2e5   :  { %v632_v44 = vpop.f32.mrf.mxu0  ;;  %v673_v54 = vpop.f32.mrf.mxu1 }
 0x2e6   :  { %v684_v42 = vrot.slane %v632_v44, 4  ;;  %v686_v58 = vrot.slane %v673_v54, 4 }
 0x2e7   :  { %v634_v45 = vpop.f32.mrf.mxu0  ;;  %v675_v46 = vpop.f32.mrf.mxu1 }
 0x2e8   :  { %v692_v3 = vadd.f32 %v684_v42, %v3636_v5  ;;  %v685_v7 = vrot.slane %v634_v45, 4  ;;  %v687_v63 = vrot.slane %v675_v46, 4  ;;  %v694_v53 = vadd.f32 %v686_v58, %v3643_v43 }
 0x2e9   :  { %v636_v38 = vpop.f32.mrf.mxu0  ;;  %v677_v47 = vpop.f32.mrf.mxu1 }
 0x2ea   :  { %3178 = vtanh.f32 %v692_v3  ;;  %v693_v56 = vadd.f32 %v685_v7, %v3634_v1  ;;  %v695_v59 = vadd.f32 %v687_v63, %v3640_v51  ;;  %v707_v3 = vrot.slane %v3692_v55, 6 }
 0x2eb   :  { %v637_v6 = vpop.f32.mrf.mxu0  ;;  %v678_v49 = vpop.f32.mrf.mxu1 }
 0x2ec   :  { %3180 = vtanh.f32 %v693_v56 }
 0x2ed   :  { %3182 = vtanh.f32 %v695_v59 }
 0x2ee   :  { %3184 = vtanh.f32 %v694_v53 }
 0x2f7   :  { %v3179_v41 = vpop.eup %3178 }
 0x2f8   :  { %v700_v44 = vmul.f32 0.5, %v3179_v41  ;;  %v4406_v41 = vmov 0  }
 0x2f9   :  { %v3181_v0 = vpop.eup %3180 }
 0x2fa   :  { %v703_v42 = vadd.f32 0.5, %v700_v44  ;;  %v701_v45 = vmul.f32 0.5, %v3181_v0  ;;  %v3183_v38 = vpop.eup %3182  ;;  %v1300_v0 = vsel %vm1299_vm1, %v3649_v57, %v3695_v61 }
 0x2fb   :  { %v3185_v63 = vpop.eup %3184 }
 0x2fc   :  { %v704_v46 = vadd.f32 0.5, %v701_v45  ;;  %v710_v47 = vmul.f32 %v3183_v38, %v703_v42  ;;  %v702_v54 = vmul.f32 0.5, %v3185_v63 }
 0x2fe   :  { %v709_v7 = vmul.f32 %v707_v3, %v704_v46  ;;  %v705_v56 = vadd.f32 0.5, %v702_v54 }
 0x300   :  { %v3738_v6 = vadd.f32 %v710_v47, %v709_v7 }
 0x302   :  { %3186 = vtanh.f32 %v3738_v6 }
 0x30f   :  { %v3187_v49 = vpop.eup %3186 }
 0x310   :  { %v713_v59 = vmul.f32 %v3187_v49, %v705_v56 }
 0x312   :  { %v714_v58 = vpack.c.bf16 %v713_v59, %v713_v59  ;;  %v3745_v55 = vsel %vm1301_vm2, %v1300_v0, %v713_v59 }
 0x314   :  { %v716_v53 = vrot.slane %v714_v58, 2 }
 0x316   :  { %751 = vmatmul.mubr.bf16.vlgmr.msra.gmra.mxu0 %v716_v53  ;;  %792 = vmatmul.mubr.bf16.vlgmr.msra.gmra.mxu1 %v716_v53 }
 0x317   :  { %839 = vmatpush1.bf16.msra.mxu0 %v3471_v4  ;;  %880 = vmatpush1.bf16.msra.mxu1 %v3494_v14 }
 0x318   :  { %840 = vmatprep.subr.bf16.mxu0 %v3475_v8  ;;  %881 = vmatprep.subr.bf16.mxu1 %v3498_v16 }
 0x319   :  { %870 = vmatprep.mubr.bf16.mxu0 %v4406_v41  ;;  %911 = vmatprep.mubr.bf16.mxu1 %v4406_v41 }
 0x31b   :  { %841 = vmatpush1.bf16.msra.mxu0 %v3477_v9  ;;  %882 = vmatpush1.bf16.msra.mxu1 %v3504_v18 }
 0x31c   :  { %842 = vmatprep.subr.bf16.mxu0 %v3481_v10  ;;  %883 = vmatprep.subr.bf16.mxu1 %v3512_v20 }
 0x31f   :  { %843 = vmatpush1.bf16.msra.mxu0 %v3483_v11  ;;  %884 = vmatpush1.bf16.msra.mxu1 %v3519_v22 }
 0x320   :  { %844 = vmatprep.subr.bf16.mxu0 %v3490_v13  ;;  %885 = vmatprep.subr.bf16.mxu1 %v3523_v24 }
 0x323   :  { %845 = vmatpush1.bf16.msra.mxu0 %v3496_v15  ;;  %886 = vmatpush1.bf16.msra.mxu1 %v3529_v26 }
 0x324   :  { %846 = vmatprep.subr.bf16.mxu0 %v3501_v17  ;;  %887 = vmatprep.subr.bf16.mxu1 %v3535_v28 }
 0x327   :  { %847 = vmatpush1.bf16.msra.mxu0 %v3508_v19  ;;  %888 = vmatpush1.bf16.msra.mxu1 %v3541_v30 }
 0x328   :  { %848 = vmatprep.subr.bf16.mxu0 %v3514_v21  ;;  %889 = vmatprep.subr.bf16.mxu1 %v3545_v32 }
 0x32b   :  { %849 = vmatpush1.bf16.msra.mxu0 %v3521_v23  ;;  %890 = vmatpush1.bf16.msra.mxu1 %v3551_v33 }
 0x32c   :  { %850 = vmatprep.subr.bf16.mxu0 %v3527_v25  ;;  %891 = vmatprep.subr.bf16.mxu1 %v3553_v34 }
 0x32f   :  { %851 = vmatpush1.bf16.msra.mxu0 %v3533_v27  ;;  %892 = vmatpush1.bf16.msra.mxu1 %v3559_v35 }
 0x330   :  { %852 = vmatprep.subr.bf16.mxu0 %v3539_v29  ;;  %893 = vmatprep.subr.bf16.mxu1 %v3562_v36 }
 0x333   :  { %853 = vmatpush1.bf16.msra.mxu0 %v3543_v31  ;;  %894 = vmatpush1.bf16.msra.mxu1 %v3568_v37 }
 0x334   :  { %943 = vmatprep.subr.bf16.mxu0 %v3469_v2  ;;  %984 = vmatprep.subr.bf16.mxu1 %v3486_v12 }
 0x3d6   :  { %v752_v4 = vpop.f32.mrf.mxu0  ;;  %v793_v57 = vpop.f32.mrf.mxu1 }
 0x3d7   :  { %v804_v61 = vrot.slane %v752_v4, 2  ;;  %v806_v12 = vrot.slane %v793_v57, 2  ;;  %v827_v4 = vrot.slane %v3738_v6, 6  ;;  %v3793_v6 = vld [vmem:[#allocation5 + $0x200] ss:$16 sps:$4 sm:$0xff]  }
 0x3d8   :  { %v754_v44 = vpop.f32.mrf.mxu0  ;;  %v795_v42 = vpop.f32.mrf.mxu1 }
 0x3d9   :  { %v812_v45 = vadd.f32 %v804_v61, %v3636_v5  ;;  %v805_v46 = vrot.slane %v754_v44, 2  ;;  %v807_v3 = vrot.slane %v795_v42, 2  ;;  %v814_v56 = vadd.f32 %v806_v12, %v3643_v43 }
 0x3da   :  { %v756_v38 = vpop.f32.mrf.mxu0  ;;  %v797_v7 = vpop.f32.mrf.mxu1 }
 0x3db   :  { %3188 = vtanh.f32 %v812_v45  ;;  %v813_v47 = vadd.f32 %v805_v46, %v3634_v1  ;;  %v815_v2 = vadd.f32 %v807_v3, %v3640_v51 }
 0x3dc   :  { %v757_v63 = vpop.f32.mrf.mxu0  ;;  %v798_v54 = vpop.f32.mrf.mxu1 }
 0x3dd   :  { %3190 = vtanh.f32 %v813_v47 }
 0x3de   :  { %3192 = vtanh.f32 %v815_v2 }
 0x3df   :  { %3194 = vtanh.f32 %v814_v56 }
 0x3e8   :  { %v3189_v49 = vpop.eup %3188 }
 0x3e9   :  { %v820_v59 = vmul.f32 0.5, %v3189_v49  ;;  %v3846_v49 = vld [vmem:[#allocation5 + $0x208] ss:$16 sps:$4 sm:$0xff]  }
 0x3ea   :  { %v3191_v0 = vpop.eup %3190 }
 0x3eb   :  { %v823_v5 = vadd.f32 0.5, %v820_v59  ;;  %v821_v58 = vmul.f32 0.5, %v3191_v0  ;;  %v3193_v61 = vpop.eup %3192  ;;  %v3849_v59 = vld [vmem:[#allocation5 + $0x1e4] ss:$16 sps:$4 sm:$0xff]   ;;  %v3852_v0 = vld [vmem:[#allocation5 + $0x1ec] ss:$16 sps:$4 sm:$0xff]  }
 0x3ec   :  { %v3195_v51 = vpop.eup %3194 }
 0x3ed   :  { %v824_v53 = vadd.f32 0.5, %v821_v58  ;;  %v830_v44 = vmul.f32 %v3193_v61, %v823_v5  ;;  %v822_v57 = vmul.f32 0.5, %v3195_v51  ;;  %v3857_v5 = vld [vmem:[#allocation5 + $0x1e0] ss:$16 sps:$4 sm:$0xff]   ;;  %v3860_v58 = vld [vmem:[#allocation5 + $0x1e8] ss:$16 sps:$4 sm:$0xff]  }
 0x3ee   :  { %v3869_v61 = vld [vmem:[#allocation5 + $0x1c0] ss:$16 sps:$4 sm:$0xff]  }
 0x3ef   :  { %v829_v1 = vmul.f32 %v827_v4, %v824_v53  ;;  %v825_v45 = vadd.f32 0.5, %v822_v57  ;;  %v3863_v53 = vld [vmem:[#allocation5 + $0x1c4] ss:$16 sps:$4 sm:$0xff]   ;;  %v3866_v4 = vld [vmem:[#allocation5 + $0x1cc] ss:$16 sps:$4 sm:$0xff]  }
 0x3f0   :  { %v3881_v51 = vld [vmem:[#allocation5 + $0x1a0] ss:$16 sps:$4 sm:$0xff]   ;;  %v3884_v57 = vld [vmem:[#allocation5 + $0x1a8] ss:$16 sps:$4 sm:$0xff]  }
 0x3f1   :  { %v3786_v42 = vadd.f32 %v830_v44, %v829_v1  ;;  %v3872_v1 = vld [vmem:[#allocation5 + $0x1c8] ss:$16 sps:$4 sm:$0xff]   ;;  %v3875_v44 = vld [vmem:[#allocation5 + $0x1a4] ss:$16 sps:$4 sm:$0xff]  }
 0x3f3   :  { %3196 = vtanh.f32 %v3786_v42 }
 0x400   :  { %v3197_v43 = vpop.eup %3196 }
 0x401   :  { %v833_v46 = vmul.f32 %v3197_v43, %v825_v45  ;;  %v3887_v45 = vld [vmem:[#allocation5 + $0x184] ss:$16 sps:$4 sm:$0xff]   ;;  %v3890_v43 = vld [vmem:[#allocation5 + $0x18c] ss:$16 sps:$4 sm:$0xff]  }
 0x403   :  { %v834_v3 = vpack.c.bf16 %v833_v46, %v833_v46  ;;  %v3791_v38 = vsel %vm1303_vm3, %v3745_v55, %v833_v46  ;;  %v3893_v46 = vld [vmem:[#allocation5 + $0x180] ss:$16 sps:$4 sm:$0xff]  }
 0x405   :  { %v836_v7 = vrot.slane %v834_v3, 3  ;;  %v3896_v3 = vld [vmem:[#allocation5 + $0x188] ss:$16 sps:$4 sm:$0xff]  }
 0x407   :  { %871 = vmatmul.mubr.bf16.vlgmr.msra.gmra.mxu0 %v836_v7  ;;  %912 = vmatmul.mubr.bf16.vlgmr.msra.gmra.mxu1 %v836_v7  ;;  %v3899_v7 = vld [vmem:[#allocation5 + $0x164] ss:$16 sps:$4 sm:$0xff]  }
 0x408   :  { %944 = vmatpush1.bf16.msra.mxu0 %v3793_v6  ;;  %985 = vmatpush1.bf16.msra.mxu1 %v3494_v14 }
 0x409   :  { %945 = vmatprep.subr.bf16.mxu0 %v3475_v8  ;;  %986 = vmatprep.subr.bf16.mxu1 %v3498_v16  ;;  %v3827_v8 = vld [vmem:[#allocation5 + $0x204] ss:$16 sps:$4 sm:$0xff]  }
 0x40a   :  { %975 = vmatprep.mubr.bf16.mxu0 %v4406_v41  ;;  %1016 = vmatprep.mubr.bf16.mxu1 %v4406_v41 }
 0x40c   :  { %946 = vmatpush1.bf16.msra.mxu0 %v3477_v9  ;;  %987 = vmatpush1.bf16.msra.mxu1 %v3504_v18  ;;  %v3830_v9 = vld [vmem:[#allocation5 + $0x20c] ss:$16 sps:$4 sm:$0xff]  }
 0x40d   :  { %947 = vmatprep.subr.bf16.mxu0 %v3481_v10  ;;  %988 = vmatprep.subr.bf16.mxu1 %v3512_v20 }
 0x410   :  { %948 = vmatpush1.bf16.msra.mxu0 %v3483_v11  ;;  %989 = vmatpush1.bf16.msra.mxu1 %v3519_v22 }
 0x411   :  { %949 = vmatprep.subr.bf16.mxu0 %v3490_v13  ;;  %990 = vmatprep.subr.bf16.mxu1 %v3523_v24 }
 0x414   :  { %950 = vmatpush1.bf16.msra.mxu0 %v3496_v15  ;;  %991 = vmatpush1.bf16.msra.mxu1 %v3529_v26 }
 0x415   :  { %951 = vmatprep.subr.bf16.mxu0 %v3501_v17  ;;  %992 = vmatprep.subr.bf16.mxu1 %v3535_v28 }
 0x418   :  { %952 = vmatpush1.bf16.msra.mxu0 %v3508_v19  ;;  %993 = vmatpush1.bf16.msra.mxu1 %v3541_v30 }
 0x419   :  { %953 = vmatprep.subr.bf16.mxu0 %v3514_v21  ;;  %994 = vmatprep.subr.bf16.mxu1 %v3545_v32 }
 0x41c   :  { %954 = vmatpush1.bf16.msra.mxu0 %v3521_v23  ;;  %995 = vmatpush1.bf16.msra.mxu1 %v3551_v33 }
 0x41d   :  { %955 = vmatprep.subr.bf16.mxu0 %v3527_v25  ;;  %996 = vmatprep.subr.bf16.mxu1 %v3553_v34 }
 0x420   :  { %956 = vmatpush1.bf16.msra.mxu0 %v3533_v27  ;;  %997 = vmatpush1.bf16.msra.mxu1 %v3559_v35 }
 0x421   :  { %957 = vmatprep.subr.bf16.mxu0 %v3539_v29  ;;  %998 = vmatprep.subr.bf16.mxu1 %v3562_v36  ;;  %v935_v29 = vrot.slane %v3786_v42, 6  ;;  %v3878_v42 = vld [vmem:[#allocation5 + $0x1ac] ss:$16 sps:$4 sm:$0xff]  }
 0x424   :  { %958 = vmatpush1.bf16.msra.mxu0 %v3543_v31  ;;  %999 = vmatpush1.bf16.msra.mxu1 %v3568_v37 }
 0x425   :  { %1063 = vmatprep.subr.bf16.mxu0 %v3827_v8  ;;  %1104 = vmatprep.subr.bf16.mxu1 %v3830_v9 }
 0x4c7   :  { %v872_v10 = vpop.f32.mrf.mxu0  ;;  %v913_v11 = vpop.f32.mrf.mxu1 }
 0x4c8   :  { %v920_v13 = vadd.f32 %v872_v10, %v3620_v50  ;;  %v922_v22 = vadd.f32 %v913_v11, %v3630_v60  ;;  %v3902_v10 = vld [vmem:[#allocation5 + $0x16c] ss:$16 sps:$4 sm:$0xff]   ;;  %v3905_v11 = vld [vmem:[#allocation5 + $0x160] ss:$16 sps:$4 sm:$0xff]  }
 0x4c9   :  { %v874_v14 = vpop.f32.mrf.mxu0  ;;  %v915_v15 = vpop.f32.mrf.mxu1 }
 0x4ca   :  { %3198 = vtanh.f32 %v920_v13  ;;  %v921_v16 = vadd.f32 %v874_v14, %v3622_v52  ;;  %v923_v19 = vadd.f32 %v915_v15, %v3632_v62  ;;  %v3909_v13 = vld [vmem:[#allocation5 + $0x144] ss:$16 sps:$4 sm:$0xff]   ;;  %v3913_v14 = vld [vmem:[#allocation5 + $0x140] ss:$16 sps:$4 sm:$0xff]  }
 0x4cb   :  { %v876_v17 = vpop.f32.mrf.mxu0  ;;  %v917_v18 = vpop.f32.mrf.mxu1  ;;  %v3917_v15 = vld [vmem:[#allocation5 + $0x124] ss:$16 sps:$4 sm:$0xff]  }
 0x4cc   :  { %3200 = vtanh.f32 %v921_v16  ;;  %v3921_v16 = vld [vmem:[#allocation5 + $0x120] ss:$16 sps:$4 sm:$0xff]  }
 0x4cd   :  { %v877_v20 = vpop.f32.mrf.mxu0  ;;  %v918_v21 = vpop.f32.mrf.mxu1  ;;  %3202 = vtanh.f32 %v923_v19 }
 0x4ce   :  { %3204 = vtanh.f32 %v922_v22 }
 0x4d7   :  { %v3199_v23 = vpop.eup %3198 }
 0x4d8   :  { %v928_v24 = vmul.f32 0.5, %v3199_v23 }
 0x4d9   :  { %v3201_v25 = vpop.eup %3200 }
 0x4da   :  { %v931_v26 = vadd.f32 0.5, %v928_v24  ;;  %v929_v27 = vmul.f32 0.5, %v3201_v25  ;;  %v3203_v30 = vpop.eup %3202 }
 0x4db   :  { %v3205_v47 = vpop.eup %3204 }
 0x4dc   :  { %v932_v28 = vadd.f32 0.5, %v929_v27  ;;  %v938_v32 = vmul.f32 %v3203_v30, %v931_v26  ;;  %v930_v63 = vmul.f32 0.5, %v3205_v47 }
 0x4de   :  { %v937_v31 = vmul.f32 %v935_v29, %v932_v28  ;;  %v933_v54 = vadd.f32 0.5, %v930_v63 }
 0x4e0   :  { %v3838_v55 = vadd.f32 %v938_v32, %v937_v31 }
 0x4e2   :  { %3206 = vtanh.f32 %v3838_v55  ;;  %v1052_v32 = vrot.slane %v3838_v55, 6  ;;  %v3346_v55 = vld [vmem:[#allocation5 + $0x14c] ss:$16 sps:$4 sm:$0xff]  }
 0x4ef   :  { %v3207_v2 = vpop.eup %3206 }
 0x4f0   :  { %v3841_v12 = vmul.f32 %v3207_v2, %v933_v54 }
 0x4f2   :  { %v942_v56 = vpack.c.bf16 %v3841_v12, %v3841_v12 }
 0x4f4   :  { %976 = vmatmul.mubr.bf16.vlgmr.msra.gmra.mxu0 %v942_v56  ;;  %1017 = vmatmul.mubr.bf16.vlgmr.msra.gmra.mxu1 %v942_v56 }
 0x4f5   :  { %1064 = vmatpush1.bf16.msra.mxu0 %v3793_v6  ;;  %1105 = vmatpush1.bf16.msra.mxu1 %v3846_v49 }
 0x4f6   :  { %1065 = vmatprep.subr.bf16.mxu0 %v3849_v59  ;;  %1106 = vmatprep.subr.bf16.mxu1 %v3852_v0 }
 0x4f7   :  { %1095 = vmatprep.mubr.bf16.mxu0 %v4406_v41  ;;  %1136 = vmatprep.mubr.bf16.mxu1 %v4406_v41 }
 0x4f9   :  { %1066 = vmatpush1.bf16.msra.mxu0 %v3857_v5  ;;  %1107 = vmatpush1.bf16.msra.mxu1 %v3860_v58 }
 0x4fa   :  { %1067 = vmatprep.subr.bf16.mxu0 %v3863_v53  ;;  %1108 = vmatprep.subr.bf16.mxu1 %v3866_v4 }
 0x4fd   :  { %1068 = vmatpush1.bf16.msra.mxu0 %v3869_v61  ;;  %1109 = vmatpush1.bf16.msra.mxu1 %v3872_v1 }
 0x4fe   :  { %1069 = vmatprep.subr.bf16.mxu0 %v3875_v44  ;;  %1110 = vmatprep.subr.bf16.mxu1 %v3878_v42 }
 0x501   :  { %1070 = vmatpush1.bf16.msra.mxu0 %v3881_v51  ;;  %1111 = vmatpush1.bf16.msra.mxu1 %v3884_v57 }
 0x502   :  { %1071 = vmatprep.subr.bf16.mxu0 %v3887_v45  ;;  %1112 = vmatprep.subr.bf16.mxu1 %v3890_v43 }
 0x505   :  { %1072 = vmatpush1.bf16.msra.mxu0 %v3893_v46  ;;  %1113 = vmatpush1.bf16.msra.mxu1 %v3896_v3 }
 0x506   :  { %1073 = vmatprep.subr.bf16.mxu0 %v3899_v7  ;;  %1114 = vmatprep.subr.bf16.mxu1 %v3902_v10 }
 0x509   :  { %1074 = vmatpush1.bf16.msra.mxu0 %v3905_v11  ;;  %1115 = vmatpush1.bf16.msra.mxu1 %v3551_v33 }
 0x50a   :  { %1075 = vmatprep.subr.bf16.mxu0 %v3909_v13  ;;  %1116 = vmatprep.subr.bf16.mxu1 %v3553_v34 }
 0x50d   :  { %1076 = vmatpush1.bf16.msra.mxu0 %v3913_v14  ;;  %1117 = vmatpush1.bf16.msra.mxu1 %v3559_v35 }
 0x50e   :  { %1077 = vmatprep.subr.bf16.mxu0 %v3917_v15  ;;  %1118 = vmatprep.subr.bf16.mxu1 %v3562_v36 }
 0x511   :  { %1078 = vmatpush1.bf16.msra.mxu0 %v3921_v16  ;;  %1119 = vmatpush1.bf16.msra.mxu1 %v3568_v37 }
 0x512   :  { %1183 = vmatprep.subr.bf16.mxu0 %v3827_v8  ;;  %1224 = vmatprep.subr.bf16.mxu1 %v3830_v9 }
 0x5b4   :  { %v977_v33 = vpop.f32.mrf.mxu0  ;;  %v1018_v34 = vpop.f32.mrf.mxu1 }
 0x5b5   :  { %v1029_v17 = vrot.slane %v977_v33, 6  ;;  %v1031_v9 = vrot.slane %v1018_v34, 6 }
 0x5b6   :  { %v979_v35 = vpop.f32.mrf.mxu0  ;;  %v1020_v18 = vpop.f32.mrf.mxu1 }
 0x5b7   :  { %v1037_v19 = vadd.f32 %v1029_v17, %v3620_v50  ;;  %v1030_v20 = vrot.slane %v979_v35, 6  ;;  %v1032_v21 = vrot.slane %v1020_v18, 6  ;;  %v1039_v25 = vadd.f32 %v1031_v9, %v3630_v60 }
 0x5b8   :  { %v981_v36 = vpop.f32.mrf.mxu0  ;;  %v1022_v22 = vpop.f32.mrf.mxu1 }
 0x5b9   :  { %3208 = vtanh.f32 %v1037_v19  ;;  %v1038_v23 = vadd.f32 %v1030_v20, %v3622_v52  ;;  %v1040_v8 = vadd.f32 %v1032_v21, %v3632_v62 }
 0x5ba   :  { %v982_v24 = vpop.f32.mrf.mxu0  ;;  %v1023_v37 = vpop.f32.mrf.mxu1 }
 0x5bb   :  { %3210 = vtanh.f32 %v1038_v23 }
 0x5bc   :  { %3212 = vtanh.f32 %v1040_v8 }
 0x5bd   :  { %3214 = vtanh.f32 %v1039_v25 }
 0x5c6   :  { %v3209_v26 = vpop.eup %3208 }
 0x5c7   :  { %v1045_v27 = vmul.f32 0.5, %v3209_v26 }
 0x5c8   :  { %v3211_v28 = vpop.eup %3210 }
 0x5c9   :  { %v1048_v29 = vadd.f32 0.5, %v1045_v27  ;;  %v1046_v30 = vmul.f32 0.5, %v3211_v28  ;;  %v3213_v47 = vpop.eup %3212 }
 0x5ca   :  { %v3215_v56 = vpop.eup %3214 }
 0x5cb   :  { %v1049_v31 = vadd.f32 0.5, %v1046_v30  ;;  %v1055_v54 = vmul.f32 %v3213_v47, %v1048_v29  ;;  %v1047_v33 = vmul.f32 0.5, %v3215_v56  ;;  %v3054_v47 = vld [vmem:[#allocation5 + $0x100] ss:$16 sps:$4 sm:$0xff]   ;;  %v3063_v56 = vld [vmem:[#allocation5 + $0xe8] ss:$16 sps:$4 sm:$0xff]  }
 0x5cd   :  { %v1054_v63 = vmul.f32 %v1052_v32, %v1049_v31  ;;  %v1050_v34 = vadd.f32 0.5, %v1047_v33  ;;  %v3056_v31 = vld [vmem:[#allocation5 + $0x104] ss:$16 sps:$4 sm:$0xff]   ;;  %v3059_v32 = vld [vmem:[#allocation5 + $0x10c] ss:$16 sps:$4 sm:$0xff]  }
 0x5ce   :  { %v3068_v33 = vld [vmem:[#allocation5 + $0xc4] ss:$16 sps:$4 sm:$0xff]  }
 0x5cf   :  { %v3932_v2 = vadd.f32 %v1055_v54, %v1054_v63  ;;  %v3057_v63 = vld [vmem:[#allocation5 + $0x108] ss:$16 sps:$4 sm:$0xff]   ;;  %v3065_v54 = vld [vmem:[#allocation5 + $0xec] ss:$16 sps:$4 sm:$0xff]  }
 0x5d1   :  { %3216 = vtanh.f32 %v3932_v2  ;;  %v1172_v21 = vrot.slane %v3932_v2, 6  ;;  %v3060_v2 = vld [vmem:[#allocation5 + $0xe0] ss:$16 sps:$4 sm:$0xff]  }
 0x5de   :  { %v3217_v17 = vpop.eup %3216 }
 0x5df   :  { %v3935_v35 = vmul.f32 %v3217_v17, %v1050_v34  ;;  %v3071_v34 = vld [vmem:[#allocation5 + $0xcc] ss:$16 sps:$4 sm:$0xff]   ;;  %v3066_v17 = vld [vmem:[#allocation5 + $0xc0] ss:$16 sps:$4 sm:$0xff]  }
 0x5e1   :  { %v1059_v18 = vpack.c.bf16 %v3935_v35, %v3935_v35  ;;  %v1305_v27 = vsel %vm1299_vm1, %v3841_v12, %v3935_v35  ;;  %v3062_v12 = vld [vmem:[#allocation5 + $0xe4] ss:$16 sps:$4 sm:$0xff]   ;;  %v3069_v35 = vld [vmem:[#allocation5 + $0xc8] ss:$16 sps:$4 sm:$0xff]  }
 0x5e3   :  { %v1061_v19 = vrot.slane %v1059_v18, 1  ;;  %v3074_v18 = vld [vmem:[#allocation5 + $0xa4] ss:$16 sps:$4 sm:$0xff]  }
 0x5e5   :  { %1096 = vmatmul.mubr.bf16.vlgmr.msra.gmra.mxu0 %v1061_v19  ;;  %1137 = vmatmul.mubr.bf16.vlgmr.msra.gmra.mxu1 %v1061_v19  ;;  %v3077_v19 = vld [vmem:[#allocation5 + $0xac] ss:$16 sps:$4 sm:$0xff]  }
 0x5e6   :  { %1184 = vmatpush1.bf16.msra.mxu0 %v3793_v6  ;;  %1225 = vmatpush1.bf16.msra.mxu1 %v3846_v49  ;;  %v3345_v6 = vld [vmem:[#allocation5 + $0x168] ss:$16 sps:$4 sm:$0xff]  }
 0x5e7   :  { %1185 = vmatprep.subr.bf16.mxu0 %v3849_v59  ;;  %1226 = vmatprep.subr.bf16.mxu1 %v3852_v0  ;;  %v3347_v49 = vld [vmem:[#allocation5 + $0x148] ss:$16 sps:$4 sm:$0xff]   ;;  %v3348_v59 = vld [vmem:[#allocation5 + $0x12c] ss:$16 sps:$4 sm:$0xff]  }
 0x5e8   :  { %1215 = vmatprep.mubr.bf16.mxu0 %v4406_v41  ;;  %1256 = vmatprep.mubr.bf16.mxu1 %v4406_v41  ;;  %v3349_v0 = vld [vmem:[#allocation5 + $0x128] ss:$16 sps:$4 sm:$0xff]  }
 0x5ea   :  { %1186 = vmatpush1.bf16.msra.mxu0 %v3857_v5  ;;  %1227 = vmatpush1.bf16.msra.mxu1 %v3860_v58 }
 0x5eb   :  { %1187 = vmatprep.subr.bf16.mxu0 %v3863_v53  ;;  %1228 = vmatprep.subr.bf16.mxu1 %v3866_v4 }
 0x5ee   :  { %1188 = vmatpush1.bf16.msra.mxu0 %v3869_v61  ;;  %1229 = vmatpush1.bf16.msra.mxu1 %v3872_v1 }
 0x5ef   :  { %1189 = vmatprep.subr.bf16.mxu0 %v3875_v44  ;;  %1230 = vmatprep.subr.bf16.mxu1 %v3878_v42 }
 0x5f2   :  { %1190 = vmatpush1.bf16.msra.mxu0 %v3881_v51  ;;  %1231 = vmatpush1.bf16.msra.mxu1 %v3884_v57 }
 0x5f3   :  { %1191 = vmatprep.subr.bf16.mxu0 %v3887_v45  ;;  %1232 = vmatprep.subr.bf16.mxu1 %v3890_v43 }
 0x5f6   :  { %1192 = vmatpush1.bf16.msra.mxu0 %v3893_v46  ;;  %1233 = vmatpush1.bf16.msra.mxu1 %v3896_v3 }
 0x5f7   :  { %1193 = vmatprep.subr.bf16.mxu0 %v3899_v7  ;;  %1234 = vmatprep.subr.bf16.mxu1 %v3902_v10 }
 0x5fa   :  { %1194 = vmatpush1.bf16.msra.mxu0 %v3905_v11  ;;  %1235 = vmatpush1.bf16.msra.mxu1 %v3345_v6  ;;  %v3072_v6 = vld [vmem:[#allocation5 + $0xa0] ss:$16 sps:$4 sm:$0xff]  }
 0x5fb   :  { %1195 = vmatprep.subr.bf16.mxu0 %v3909_v13  ;;  %1236 = vmatprep.subr.bf16.mxu1 %v3346_v55  ;;  %v3075_v55 = vld [vmem:[#allocation5 + $0xa8] ss:$16 sps:$4 sm:$0xff]  }
 0x5fe   :  { %1196 = vmatpush1.bf16.msra.mxu0 %v3913_v14  ;;  %1237 = vmatpush1.bf16.msra.mxu1 %v3347_v49  ;;  %v3078_v49 = vld [vmem:[#allocation5 + $0x80] ss:$16 sps:$4 sm:$0xff]  }
 0x5ff   :  { %1197 = vmatprep.subr.bf16.mxu0 %v3917_v15  ;;  %1238 = vmatprep.subr.bf16.mxu1 %v3348_v59  ;;  %v3080_v59 = vld [vmem:[#allocation5 + $0x84] ss:$16 sps:$4 sm:$0xff]  }
 0x602   :  { %1198 = vmatpush1.bf16.msra.mxu0 %v3921_v16  ;;  %1239 = vmatpush1.bf16.msra.mxu1 %v3349_v0  ;;  %v3081_v0 = vld [vmem:[#allocation5 + $0x88] ss:$16 sps:$4 sm:$0xff]  }
 0x603   :  { %1549 = vmatprep.subr.bf16.mxu0 %v3056_v31  ;;  %1592 = vmatprep.subr.bf16.mxu1 %v3059_v32 }
 0x6a5   :  { %v1097_v5 = vpop.f32.mrf.mxu0  ;;  %v1138_v58 = vpop.f32.mrf.mxu1 }
 0x6a6   :  { %v1149_v53 = vrot.slane %v1097_v5, 4  ;;  %v1151_v7 = vrot.slane %v1138_v58, 4  ;;  %v3083_v5 = vld [vmem:[#allocation5 + $0x8c] ss:$16 sps:$4 sm:$0xff]   ;;  %v3086_v58 = vld [vmem:[#allocation5 + $0x64] ss:$16 sps:$4 sm:$0xff]  }
 0x6a7   :  { %v1099_v4 = vpop.f32.mrf.mxu0  ;;  %v1140_v61 = vpop.f32.mrf.mxu1 }
 0x6a8   :  { %v1157_v1 = vadd.f32 %v1149_v53, %v3620_v50  ;;  %v1150_v44 = vrot.slane %v1099_v4, 4  ;;  %v1152_v42 = vrot.slane %v1140_v61, 4  ;;  %v1159_v10 = vadd.f32 %v1151_v7, %v3630_v60  ;;  %v3089_v53 = vld [vmem:[#allocation5 + $0x6c] ss:$16 sps:$4 sm:$0xff]   ;;  %v3084_v4 = vld [vmem:[#allocation5 + $0x60] ss:$16 sps:$4 sm:$0xff]  }
 0x6a9   :  { %v1101_v51 = vpop.f32.mrf.mxu0  ;;  %v1142_v57 = vpop.f32.mrf.mxu1  ;;  %v3087_v61 = vld [vmem:[#allocation5 + $0x68] ss:$16 sps:$4 sm:$0xff]   ;;  %v3984_v7 = vld [vmem:[#allocation5 + $0x30c] ss:$16 sps:$4 sm:$0xff]  }
 0x6aa   :  { %3218 = vtanh.f32 %v1157_v1  ;;  %v1158_v45 = vadd.f32 %v1150_v44, %v3622_v52  ;;  %v1160_v3 = vadd.f32 %v1152_v42, %v3632_v62  ;;  %v3092_v1 = vld [vmem:[#allocation5 + $0x44] ss:$16 sps:$4 sm:$0xff]   ;;  %v3095_v44 = vld [vmem:[#allocation5 + $0x4c] ss:$16 sps:$4 sm:$0xff]   ;;  %v3090_v42 = vld [vmem:[#allocation5 + $0x40] ss:$16 sps:$4 sm:$0xff]  }
 0x6ab   :  { %v1102_v43 = vpop.f32.mrf.mxu0  ;;  %v1143_v46 = vpop.f32.mrf.mxu1  ;;  %v3093_v51 = vld [vmem:[#allocation5 + $0x48] ss:$16 sps:$4 sm:$0xff]   ;;  %v3098_v57 = vld [vmem:[#allocation5 + $0x24] ss:$16 sps:$4 sm:$0xff]  }
 0x6ac   :  { %3220 = vtanh.f32 %v1158_v45  ;;  %v3101_v45 = vld [vmem:[#allocation5 + $0x2c] ss:$16 sps:$4 sm:$0xff]   ;;  %v3096_v43 = vld [vmem:[#allocation5 + $0x20] ss:$16 sps:$4 sm:$0xff]   ;;  %v3099_v46 = vld [vmem:[#allocation5 + $0x28] ss:$16 sps:$4 sm:$0xff]  }
 0x6ad   :  { %3222 = vtanh.f32 %v1160_v3  ;;  %v3982_v3 = vld [vmem:[#allocation5 + $0x304] ss:$16 sps:$4 sm:$0xff]  }
 0x6ae   :  { %3224 = vtanh.f32 %v1159_v10 }
 0x6b7   :  { %v3219_v11 = vpop.eup %3218 }
 0x6b8   :  { %v1165_v13 = vmul.f32 0.5, %v3219_v11 }
 0x6b9   :  { %v3221_v14 = vpop.eup %3220 }
 0x6ba   :  { %v1168_v15 = vadd.f32 0.5, %v1165_v13  ;;  %v1166_v16 = vmul.f32 0.5, %v3221_v14  ;;  %v3223_v36 = vpop.eup %3222 }
 0x6bb   :  { %v3225_v37 = vpop.eup %3224 }
 0x6bc   :  { %v1169_v20 = vadd.f32 0.5, %v1166_v16  ;;  %v1175_v23 = vmul.f32 %v3223_v36, %v1168_v15  ;;  %v1167_v8 = vmul.f32 0.5, %v3225_v37 }
 0x6be   :  { %v1174_v22 = vmul.f32 %v1172_v21, %v1169_v20  ;;  %v1170_v9 = vadd.f32 0.5, %v1167_v8 }
 0x6c0   :  { %v3971_v24 = vadd.f32 %v1175_v23, %v1174_v22 }
 0x6c2   :  { %3226 = vtanh.f32 %v3971_v24 }
 0x6cf   :  { %v3227_v25 = vpop.eup %3226 }
 0x6d0   :  { %v1178_v26 = vmul.f32 %v3227_v25, %v1170_v9 }
 0x6d2   :  { %v1179_v28 = vpack.c.bf16 %v1178_v26, %v1178_v26  ;;  %v3978_v29 = vsel %vm1301_vm2, %v1305_v27, %v1178_v26 }
 0x6d4   :  { %v1181_v30 = vrot.slane %v1179_v28, 2 }
 0x6d6   :  { %1216 = vmatmul.mubr.bf16.vlgmr.msra.gmra.mxu0 %v1181_v30  ;;  %1257 = vmatmul.mubr.bf16.vlgmr.msra.gmra.mxu1 %v1181_v30 }
 0x6d7   :  { %1581 = vmatprep.mubr.bf16.mxu0 %v4406_v41  ;;  %1624 = vmatprep.mubr.bf16.mxu1 %v4406_v41 }
 0x6d8   :  { %1550 = vmatpush1.bf16.msra.mxu0 %v3054_v47  ;;  %1593 = vmatpush1.bf16.msra.mxu1 %v3057_v63  ;;  %v1292_v47 = vrot.slane %v3971_v24, 6  ;;  %v4000_v24 = vld [vmem:[#allocation5 + $0x2e4] ss:$16 sps:$4 sm:$0xff]  }
 0x6d9   :  { %1551 = vmatprep.subr.bf16.mxu0 %v3062_v12  ;;  %1594 = vmatprep.subr.bf16.mxu1 %v3065_v54 }
 0x6dc   :  { %1552 = vmatpush1.bf16.msra.mxu0 %v3060_v2  ;;  %1595 = vmatpush1.bf16.msra.mxu1 %v3063_v56 }
 0x6dd   :  { %1553 = vmatprep.subr.bf16.mxu0 %v3068_v33  ;;  %1596 = vmatprep.subr.bf16.mxu1 %v3071_v34 }
 0x6e0   :  { %1554 = vmatpush1.bf16.msra.mxu0 %v3066_v17  ;;  %1597 = vmatpush1.bf16.msra.mxu1 %v3069_v35  ;;  %v3995_v17 = vld [vmem:[#allocation5 + $0x300] ss:$16 sps:$4 sm:$0xff]   ;;  %v3997_v35 = vld [vmem:[#allocation5 + $0x308] ss:$16 sps:$4 sm:$0xff]  }
 0x6e1   :  { %1555 = vmatprep.subr.bf16.mxu0 %v3074_v18  ;;  %1598 = vmatprep.subr.bf16.mxu1 %v3077_v19  ;;  %v4002_v19 = vld [vmem:[#allocation5 + $0x2ec] ss:$16 sps:$4 sm:$0xff]  }
 0x6e4   :  { %1556 = vmatpush1.bf16.msra.mxu0 %v3072_v6  ;;  %1599 = vmatpush1.bf16.msra.mxu1 %v3075_v55  ;;  %v4006_v6 = vld [vmem:[#allocation5 + $0x2e0] ss:$16 sps:$4 sm:$0xff]   ;;  %v4008_v55 = vld [vmem:[#allocation5 + $0x2e8] ss:$16 sps:$4 sm:$0xff]  }
 0x6e5   :  { %1557 = vmatprep.subr.bf16.mxu0 %v3080_v59  ;;  %1600 = vmatprep.subr.bf16.mxu1 %v3083_v5  ;;  %v4022_v59 = vld [vmem:[#allocation5 + $0x2c8] ss:$16 sps:$4 sm:$0xff]   ;;  %v4028_v5 = vld [vmem:[#allocation5 + $0x2ac] ss:$16 sps:$4 sm:$0xff]  }
 0x6e8   :  { %1558 = vmatpush1.bf16.msra.mxu0 %v3078_v49  ;;  %1601 = vmatpush1.bf16.msra.mxu1 %v3081_v0  ;;  %v4020_v49 = vld [vmem:[#allocation5 + $0x2c0] ss:$16 sps:$4 sm:$0xff]   ;;  %v4026_v0 = vld [vmem:[#allocation5 + $0x2a4] ss:$16 sps:$4 sm:$0xff]  }
 0x6e9   :  { %1559 = vmatprep.subr.bf16.mxu0 %v3086_v58  ;;  %1602 = vmatprep.subr.bf16.mxu1 %v3089_v53  ;;  %v4032_v58 = vld [vmem:[#allocation5 + $0x2a0] ss:$16 sps:$4 sm:$0xff]   ;;  %v4034_v53 = vld [vmem:[#allocation5 + $0x2a8] ss:$16 sps:$4 sm:$0xff]  }
 0x6ec   :  { %1560 = vmatpush1.bf16.msra.mxu0 %v3084_v4  ;;  %1603 = vmatpush1.bf16.msra.mxu1 %v3087_v61  ;;  %v4038_v4 = vld [vmem:[#allocation5 + $0x284] ss:$16 sps:$4 sm:$0xff]   ;;  %v4040_v61 = vld [vmem:[#allocation5 + $0x28c] ss:$16 sps:$4 sm:$0xff]  }
 0x6ed   :  { %1561 = vmatprep.subr.bf16.mxu0 %v3092_v1  ;;  %1604 = vmatprep.subr.bf16.mxu1 %v3095_v44  ;;  %v4044_v1 = vld [vmem:[#allocation5 + $0x280] ss:$16 sps:$4 sm:$0xff]   ;;  %v4046_v44 = vld [vmem:[#allocation5 + $0x288] ss:$16 sps:$4 sm:$0xff]  }
 0x6f0   :  { %1562 = vmatpush1.bf16.msra.mxu0 %v3090_v42  ;;  %1605 = vmatpush1.bf16.msra.mxu1 %v3093_v51  ;;  %v4050_v42 = vld [vmem:[#allocation5 + $0x264] ss:$16 sps:$4 sm:$0xff]   ;;  %v4052_v51 = vld [vmem:[#allocation5 + $0x26c] ss:$16 sps:$4 sm:$0xff]  }
 0x6f1   :  { %1563 = vmatprep.subr.bf16.mxu0 %v3098_v57  ;;  %1606 = vmatprep.subr.bf16.mxu1 %v3101_v45  ;;  %v4056_v57 = vld [vmem:[#allocation5 + $0x260] ss:$16 sps:$4 sm:$0xff]   ;;  %v4058_v45 = vld [vmem:[#allocation5 + $0x268] ss:$16 sps:$4 sm:$0xff]  }
 0x6f4   :  { %1564 = vmatpush1.bf16.msra.mxu0 %v3096_v43  ;;  %1607 = vmatpush1.bf16.msra.mxu1 %v3099_v46  ;;  %v4062_v43 = vld [vmem:[#allocation5 + $0x244] ss:$16 sps:$4 sm:$0xff]   ;;  %v4064_v46 = vld [vmem:[#allocation5 + $0x24c] ss:$16 sps:$4 sm:$0xff]  }
 0x6f5   :  { %1795 = vmatprep.subr.bf16.mxu0 %v3982_v3  ;;  %1836 = vmatprep.subr.bf16.mxu1 %v3984_v7 }
 0x796   :  { %v1217_v10 = vpop.f32.mrf.mxu0  ;;  %v1258_v11 = vpop.f32.mrf.mxu1 }
 0x797   :  { %v1269_v13 = vrot.slane %v1217_v10, 2  ;;  %v1271_v25 = vrot.slane %v1258_v11, 2  ;;  %v4068_v10 = vld [vmem:[#allocation5 + $0x240] ss:$16 sps:$4 sm:$0xff]   ;;  %v4070_v11 = vld [vmem:[#allocation5 + $0x248] ss:$16 sps:$4 sm:$0xff]  }
 0x798   :  { %v1219_v14 = vpop.f32.mrf.mxu0  ;;  %v1260_v15 = vpop.f32.mrf.mxu1 }
 0x799   :  { %v1277_v16 = vadd.f32 %v1269_v13, %v3620_v50  ;;  %v1270_v20 = vrot.slane %v1219_v14, 2  ;;  %v1272_v21 = vrot.slane %v1260_v15, 2  ;;  %v1279_v26 = vadd.f32 %v1271_v25, %v3630_v60  ;;  %v4074_v13 = vld [vmem:[#allocation5 + $0x224] ss:$16 sps:$4 sm:$0xff]   ;;  %v4076_v14 = vld [vmem:[#allocation5 + $0x22c] ss:$16 sps:$4 sm:$0xff]  }
 0x79a   :  { %v1221_v36 = vpop.f32.mrf.mxu0  ;;  %v1262_v22 = vpop.f32.mrf.mxu1  ;;  %v4080_v15 = vld [vmem:[#allocation5 + $0x220] ss:$16 sps:$4 sm:$0xff]  }
 0x79b   :  { %3228 = vtanh.f32 %v1277_v16  ;;  %v1278_v23 = vadd.f32 %v1270_v20, %v3622_v52  ;;  %v1280_v9 = vadd.f32 %v1272_v21, %v3632_v62  ;;  %v4082_v16 = vld [vmem:[#allocation5 + $0x228] ss:$16 sps:$4 sm:$0xff]   ;;  %v1375_v20 = vsub.s32 1, %v3607_v39 }
 0x79c   :  { %v1222_v37 = vpop.f32.mrf.mxu0  ;;  %v1263_v8 = vpop.f32.mrf.mxu1 }
 0x79d   :  { %3230 = vtanh.f32 %v1278_v23  ;;  %v4407_v37 = vunpack.c.l.bf16 %v3609_v40 }
 0x79e   :  { %3232 = vtanh.f32 %v1280_v9  ;;  %v4408_v9 = vunpack.c.l.bf16 %v3616_v48 }
 0x79f   :  { %3234 = vtanh.f32 %v1279_v26  ;;  %v1376_v8 = vrot.slane %v4407_v37, %v1375_v20 }
 0x7a0   :  { %v1384_v25 = vrot.slane %v4408_v9, %v1375_v20 }
 0x7a8   :  { %v3229_v27 = vpop.eup %3228 }
 0x7a9   :  { %v1285_v28 = vmul.f32 0.5, %v3229_v27 }
 0x7aa   :  { %v3231_v30 = vpop.eup %3230 }
 0x7ab   :  { %v1288_v50 = vadd.f32 0.5, %v1285_v28  ;;  %v1286_v31 = vmul.f32 0.5, %v3231_v30  ;;  %v3233_v63 = vpop.eup %3232  ;;  %v4409_v28 = vunpack.c.h.bf16 %v3609_v40 }
 0x7ac   :  { %v3235_v2 = vpop.eup %3234 }
 0x7ad   :  { %v1289_v32 = vadd.f32 0.5, %v1286_v31  ;;  %v1295_v12 = vmul.f32 %v3233_v63, %v1288_v50  ;;  %v1287_v62 = vmul.f32 0.5, %v3235_v2  ;;  %v1380_v30 = vrot.slane %v4409_v28, %v1375_v20 }
 0x7ae   :  { %v4410_v50 = vunpack.c.h.bf16 %v3616_v48 }
 0x7af   :  { %v1294_v52 = vmul.f32 %v1292_v47, %v1289_v32  ;;  %v1290_v56 = vadd.f32 0.5, %v1287_v62 }
 0x7b0   :  { %v1388_v31 = vrot.slane %v4410_v50, %v1375_v20 }
 0x7b1   :  { %v1296_v54 = vadd.f32 %v1295_v12, %v1294_v52 }
 0x7b3   :  { %3236 = vtanh.f32 %v1296_v54 }
 0x7c0   :  { %v3237_v33 = vpop.eup %3236 }
 0x7c1   :  { %v1298_v34 = vmul.f32 %v3237_v33, %v1290_v56 }
 0x7c3   :  { %v1307_v60 = vsel %vm1303_vm3, %v3978_v29, %v1298_v34  ;;  %v4012_v29 = vld [vmem:[#allocation5 + $0x2c4] ss:$16 sps:$4 sm:$0xff]  }
 0x7c4   :  { %v1308_v18 = vpack.c.bf16 %v1307_v60, %v3791_v38  ;;  %v4014_v38 = vld [vmem:[#allocation5 + $0x2cc] ss:$16 sps:$4 sm:$0xff]  }
 0x7c6   :  { %1582 = vmatmul.mubr.bf16.vlgmr.msra.gmra.mxu0 %v1308_v18  ;;  %1625 = vmatmul.mubr.bf16.vlgmr.msra.gmra.mxu1 %v1308_v18 }
 0x7c7   :  { %1796 = vmatpush1.bf16.msra.mxu0 %v3995_v17  ;;  %1837 = vmatpush1.bf16.msra.mxu1 %v3997_v35 }
 0x7c8   :  { %1797 = vmatprep.subr.bf16.mxu0 %v4000_v24  ;;  %1838 = vmatprep.subr.bf16.mxu1 %v4002_v19 }
 0x7c9   :  { %1827 = vmatprep.mubr.bf16.mxu0 %v4406_v41  ;;  %1868 = vmatprep.mubr.bf16.mxu1 %v4406_v41 }
 0x7cb   :  { %1798 = vmatpush1.bf16.msra.mxu0 %v4006_v6  ;;  %1839 = vmatpush1.bf16.msra.mxu1 %v4008_v55 }
 0x7cc   :  { %1799 = vmatprep.subr.bf16.mxu0 %v4012_v29  ;;  %1840 = vmatprep.subr.bf16.mxu1 %v4014_v38 }
 0x7cf   :  { %1800 = vmatpush1.bf16.msra.mxu0 %v4020_v49  ;;  %1841 = vmatpush1.bf16.msra.mxu1 %v4022_v59 }
 0x7d0   :  { %1801 = vmatprep.subr.bf16.mxu0 %v4026_v0  ;;  %1842 = vmatprep.subr.bf16.mxu1 %v4028_v5 }
 0x7d3   :  { %1802 = vmatpush1.bf16.msra.mxu0 %v4032_v58  ;;  %1843 = vmatpush1.bf16.msra.mxu1 %v4034_v53 }
 0x7d4   :  { %1803 = vmatprep.subr.bf16.mxu0 %v4038_v4  ;;  %1844 = vmatprep.subr.bf16.mxu1 %v4040_v61 }
 0x7d7   :  { %1804 = vmatpush1.bf16.msra.mxu0 %v4044_v1  ;;  %1845 = vmatpush1.bf16.msra.mxu1 %v4046_v44 }
 0x7d8   :  { %1805 = vmatprep.subr.bf16.mxu0 %v4050_v42  ;;  %1846 = vmatprep.subr.bf16.mxu1 %v4052_v51 }
 0x7db   :  { %1806 = vmatpush1.bf16.msra.mxu0 %v4056_v57  ;;  %1847 = vmatpush1.bf16.msra.mxu1 %v4058_v45 }
 0x7dc   :  { %1807 = vmatprep.subr.bf16.mxu0 %v4062_v43  ;;  %1848 = vmatprep.subr.bf16.mxu1 %v4064_v46 }
 0x7df   :  { %1808 = vmatpush1.bf16.msra.mxu0 %v4068_v10  ;;  %1849 = vmatpush1.bf16.msra.mxu1 %v4070_v11 }
 0x7e0   :  { %1809 = vmatprep.subr.bf16.mxu0 %v4074_v13  ;;  %1850 = vmatprep.subr.bf16.mxu1 %v4076_v14 }
 0x7e3   :  { %1810 = vmatpush1.bf16.msra.mxu0 %v4080_v15  ;;  %1851 = vmatpush1.bf16.msra.mxu1 %v4082_v16 }
 0x7e4   :  { %1897 = vmatprep.subr.bf16.mxu0 %v3982_v3  ;;  %1938 = vmatprep.subr.bf16.mxu1 %v3984_v7 }
 0x7e6   :  { %1828 = vmatmul.mubr.bf16.vlgmr.msra.gmra.mxu0 %v4406_v41  ;;  %1869 = vmatmul.mubr.bf16.vlgmr.msra.gmra.mxu1 %v4406_v41 }
 0x7e7   :  { %1898 = vmatpush1.bf16.msra.mxu0 %v3995_v17  ;;  %1939 = vmatpush1.bf16.msra.mxu1 %v3997_v35 }
 0x7e8   :  { %1899 = vmatprep.subr.bf16.mxu0 %v4000_v24  ;;  %1940 = vmatprep.subr.bf16.mxu1 %v4002_v19 }
 0x7e9   :  { %1929 = vmatprep.mubr.bf16.mxu0 %v4406_v41  ;;  %1970 = vmatprep.mubr.bf16.mxu1 %v4406_v41 }
 0x7eb   :  { %1900 = vmatpush1.bf16.msra.mxu0 %v4006_v6  ;;  %1941 = vmatpush1.bf16.msra.mxu1 %v4008_v55 }
 0x7ec   :  { %1901 = vmatprep.subr.bf16.mxu0 %v4012_v29  ;;  %1942 = vmatprep.subr.bf16.mxu1 %v4014_v38 }
 0x7ef   :  { %1902 = vmatpush1.bf16.msra.mxu0 %v4020_v49  ;;  %1943 = vmatpush1.bf16.msra.mxu1 %v4022_v59 }
 0x7f0   :  { %1903 = vmatprep.subr.bf16.mxu0 %v4026_v0  ;;  %1944 = vmatprep.subr.bf16.mxu1 %v4028_v5 }
 0x7f3   :  { %1904 = vmatpush1.bf16.msra.mxu0 %v4032_v58  ;;  %1945 = vmatpush1.bf16.msra.mxu1 %v4034_v53 }
 0x7f4   :  { %1905 = vmatprep.subr.bf16.mxu0 %v4038_v4  ;;  %1946 = vmatprep.subr.bf16.mxu1 %v4040_v61 }
 0x7f7   :  { %1906 = vmatpush1.bf16.msra.mxu0 %v4044_v1  ;;  %1947 = vmatpush1.bf16.msra.mxu1 %v4046_v44 }
 0x7f8   :  { %1907 = vmatprep.subr.bf16.mxu0 %v4050_v42  ;;  %1948 = vmatprep.subr.bf16.mxu1 %v4052_v51 }
 0x7fb   :  { %1908 = vmatpush1.bf16.msra.mxu0 %v4056_v57  ;;  %1949 = vmatpush1.bf16.msra.mxu1 %v4058_v45 }
 0x7fc   :  { %1909 = vmatprep.subr.bf16.mxu0 %v4062_v43  ;;  %1950 = vmatprep.subr.bf16.mxu1 %v4064_v46 }
 0x7ff   :  { %1910 = vmatpush1.bf16.msra.mxu0 %v4068_v10  ;;  %1951 = vmatpush1.bf16.msra.mxu1 %v4070_v11 }
 0x800   :  { %1911 = vmatprep.subr.bf16.mxu0 %v4074_v13  ;;  %1952 = vmatprep.subr.bf16.mxu1 %v4076_v14 }
 0x803   :  { %1912 = vmatpush1.bf16.msra.mxu0 %v4080_v15  ;;  %1953 = vmatpush1.bf16.msra.mxu1 %v4082_v16 }
 0x804   :  { %2017 = vmatprep.subr.bf16.mxu0 %v3982_v3  ;;  %2058 = vmatprep.subr.bf16.mxu1 %v3984_v7 }
 0x886   :  { %v1583_v21 = vpop.f32.mrf.mxu0  ;;  %v1626_v36 = vpop.f32.mrf.mxu1 }
 0x887   :  { %v4143_v2 = vadd.f32 %v1583_v21, %v1376_v8 }
 0x888   :  { %v1585_v22 = vpop.f32.mrf.mxu0  ;;  %v1628_v23 = vpop.f32.mrf.mxu1 }
 0x889   :  { %v4145_v33 = vadd.f32 %v1585_v22, %v1380_v30  ;;  %v4148_v60 = vadd.f32 %v1628_v23, %v1388_v31 }
 0x88a   :  { %v1587_v26 = vpop.f32.mrf.mxu0  ;;  %v1630_v27 = vpop.f32.mrf.mxu1 }
 0x88b   :  { %v4135_v32 = vadd.f32 %v1587_v26, %v1376_v8  ;;  %v4137_v47 = vadd.f32 %v1630_v27, %v1384_v25  ;;  %v4152_v26 = vadd.f32 %v1626_v36, %v1384_v25 }
 0x88c   :  { %v1589_v63 = vpop.f32.mrf.mxu0  ;;  %v1632_v52 = vpop.f32.mrf.mxu1 }
 0x88d   :  { %v4139_v12 = vadd.f32 %v1589_v63, %v1380_v30  ;;  %v4141_v54 = vadd.f32 %v1632_v52, %v1388_v31 }
 0x8a6   :  { %v1829_v62 = vpop.f32.mrf.mxu0  ;;  %v1870_v56 = vpop.f32.mrf.mxu1 }
 0x8a7   :  { %v1877_v40 = vadd.f32 %v1829_v62, %v4143_v2  ;;  %v1879_v22 = vadd.f32 %v1870_v56, %v4152_v26 }
 0x8a8   :  { %v1831_v48 = vpop.f32.mrf.mxu0  ;;  %v1872_v34 = vpop.f32.mrf.mxu1 }
 0x8a9   :  { %3238 = vtanh.f32 %v1877_v40  ;;  %v1878_v18 = vadd.f32 %v1831_v48, %v4145_v33  ;;  %v1880_v9 = vadd.f32 %v1872_v34, %v4148_v60 }
 0x8aa   :  { %v1833_v20 = vpop.f32.mrf.mxu0  ;;  %v1874_v37 = vpop.f32.mrf.mxu1 }
 0x8ab   :  { %3240 = vtanh.f32 %v1878_v18 }
 0x8ac   :  { %v1834_v21 = vpop.f32.mrf.mxu0  ;;  %v1875_v8 = vpop.f32.mrf.mxu1  ;;  %3242 = vtanh.f32 %v1880_v9 }
 0x8ad   :  { %3244 = vtanh.f32 %v1879_v22 }
 0x8b6   :  { %v3239_v27 = vpop.eup %3238 }
 0x8b7   :  { %v1885_v28 = vmul.f32 0.5, %v3239_v27 }
 0x8b8   :  { %v3241_v30 = vpop.eup %3240 }
 0x8b9   :  { %v1888_v23 = vadd.f32 0.5, %v1885_v28  ;;  %v1886_v50 = vmul.f32 0.5, %v3241_v30  ;;  %v3243_v63 = vpop.eup %3242 }
 0x8ba   :  { %v3245_v48 = vpop.eup %3244 }
 0x8bb   :  { %v1889_v31 = vadd.f32 0.5, %v1886_v50  ;;  %v1892_v62 = vmul.f32 %v3243_v63, %v1888_v23  ;;  %v1887_v34 = vmul.f32 0.5, %v3245_v48 }
 0x8bd   :  { %v1891_v52 = vmul.f32 0.0, %v1889_v31  ;;  %v1890_v36 = vadd.f32 0.5, %v1887_v34 }
 0x8bf   :  { %v4155_v40 = vadd.f32 %v1892_v62, %v1891_v52 }
 0x8c1   :  { %3246 = vtanh.f32 %v4155_v40 }
 0x8ce   :  { %v3247_v25 = vpop.eup %3246 }
 0x8cf   :  { %v1895_v18 = vmul.f32 %v3247_v25, %v1890_v36 }
 0x8d1   :  { %v1896_v56 = vpack.c.bf16 %v1895_v18, %v1895_v18 }
 0x8d3   :  { %1930 = vmatmul.mubr.bf16.vlgmr.msra.gmra.mxu0 %v1896_v56  ;;  %1971 = vmatmul.mubr.bf16.vlgmr.msra.gmra.mxu1 %v1896_v56 }
 0x8d4   :  { %2018 = vmatpush1.bf16.msra.mxu0 %v3995_v17  ;;  %2059 = vmatpush1.bf16.msra.mxu1 %v3997_v35 }
 0x8d5   :  { %2019 = vmatprep.subr.bf16.mxu0 %v4000_v24  ;;  %2060 = vmatprep.subr.bf16.mxu1 %v4002_v19 }
 0x8d6   :  { %2049 = vmatprep.mubr.bf16.mxu0 %v4406_v41  ;;  %2090 = vmatprep.mubr.bf16.mxu1 %v4406_v41 }
 0x8d8   :  { %2020 = vmatpush1.bf16.msra.mxu0 %v4006_v6  ;;  %2061 = vmatpush1.bf16.msra.mxu1 %v4008_v55 }
 0x8d9   :  { %2021 = vmatprep.subr.bf16.mxu0 %v4012_v29  ;;  %2062 = vmatprep.subr.bf16.mxu1 %v4014_v38 }
 0x8dc   :  { %2022 = vmatpush1.bf16.msra.mxu0 %v4020_v49  ;;  %2063 = vmatpush1.bf16.msra.mxu1 %v4022_v59 }
 0x8dd   :  { %2023 = vmatprep.subr.bf16.mxu0 %v4026_v0  ;;  %2064 = vmatprep.subr.bf16.mxu1 %v4028_v5 }
 0x8e0   :  { %2024 = vmatpush1.bf16.msra.mxu0 %v4032_v58  ;;  %2065 = vmatpush1.bf16.msra.mxu1 %v4034_v53 }
 0x8e1   :  { %2025 = vmatprep.subr.bf16.mxu0 %v4038_v4  ;;  %2066 = vmatprep.subr.bf16.mxu1 %v4040_v61 }
 0x8e4   :  { %2026 = vmatpush1.bf16.msra.mxu0 %v4044_v1  ;;  %2067 = vmatpush1.bf16.msra.mxu1 %v4046_v44 }
 0x8e5   :  { %2027 = vmatprep.subr.bf16.mxu0 %v4050_v42  ;;  %2068 = vmatprep.subr.bf16.mxu1 %v4052_v51 }
 0x8e8   :  { %2028 = vmatpush1.bf16.msra.mxu0 %v4056_v57  ;;  %2069 = vmatpush1.bf16.msra.mxu1 %v4058_v45 }
 0x8e9   :  { %2029 = vmatprep.subr.bf16.mxu0 %v4062_v43  ;;  %2070 = vmatprep.subr.bf16.mxu1 %v4064_v46 }
 0x8ec   :  { %2030 = vmatpush1.bf16.msra.mxu0 %v4068_v10  ;;  %2071 = vmatpush1.bf16.msra.mxu1 %v4070_v11 }
 0x8ed   :  { %2031 = vmatprep.subr.bf16.mxu0 %v4074_v13  ;;  %2072 = vmatprep.subr.bf16.mxu1 %v4076_v14 }
 0x8f0   :  { %2032 = vmatpush1.bf16.msra.mxu0 %v4080_v15  ;;  %2073 = vmatpush1.bf16.msra.mxu1 %v4082_v16 }
 0x8f1   :  { %2137 = vmatprep.subr.bf16.mxu0 %v3982_v3  ;;  %2178 = vmatprep.subr.bf16.mxu1 %v3984_v7 }
 0x993   :  { %v1931_v20 = vpop.f32.mrf.mxu0  ;;  %v1972_v37 = vpop.f32.mrf.mxu1 }
 0x994   :  { %v1983_v9 = vrot.slane %v1931_v20, 6  ;;  %v1985_v62 = vrot.slane %v1972_v37, 6 }
 0x995   :  { %v1933_v21 = vpop.f32.mrf.mxu0  ;;  %v1974_v8 = vpop.f32.mrf.mxu1 }
 0x996   :  { %v1991_v22 = vadd.f32 %v1983_v9, %v4143_v2  ;;  %v1984_v27 = vrot.slane %v1933_v21, 6  ;;  %v1986_v28 = vrot.slane %v1974_v8, 6  ;;  %v1993_v48 = vadd.f32 %v1985_v62, %v4152_v26 }
 0x997   :  { %v1935_v30 = vpop.f32.mrf.mxu0  ;;  %v1976_v23 = vpop.f32.mrf.mxu1  ;;  %v2006_v9 = vrot.slane %v4155_v40, 6 }
 0x998   :  { %3248 = vtanh.f32 %v1991_v22  ;;  %v1992_v50 = vadd.f32 %v1984_v27, %v4145_v33  ;;  %v1994_v52 = vadd.f32 %v1986_v28, %v4148_v60 }
 0x999   :  { %v1936_v31 = vpop.f32.mrf.mxu0  ;;  %v1977_v63 = vpop.f32.mrf.mxu1 }
 0x99a   :  { %3250 = vtanh.f32 %v1992_v50 }
 0x99b   :  { %3252 = vtanh.f32 %v1994_v52 }
 0x99c   :  { %3254 = vtanh.f32 %v1993_v48 }
 0x9a5   :  { %v3249_v34 = vpop.eup %3248 }
 0x9a6   :  { %v1999_v36 = vmul.f32 0.5, %v3249_v34 }
 0x9a7   :  { %v3251_v25 = vpop.eup %3250 }
 0x9a8   :  { %v2002_v18 = vadd.f32 0.5, %v1999_v36  ;;  %v2000_v56 = vmul.f32 0.5, %v3251_v25  ;;  %v3253_v21 = vpop.eup %3252 }
 0x9a9   :  { %v3255_v28 = vpop.eup %3254 }
 0x9aa   :  { %v2003_v20 = vadd.f32 0.5, %v2000_v56  ;;  %v2009_v22 = vmul.f32 %v3253_v21, %v2002_v18  ;;  %v2001_v37 = vmul.f32 0.5, %v3255_v28 }
 0x9ac   :  { %v2008_v8 = vmul.f32 %v2006_v9, %v2003_v20  ;;  %v2004_v30 = vadd.f32 0.5, %v2001_v37 }
 0x9ae   :  { %v4197_v27 = vadd.f32 %v2009_v22, %v2008_v8 }
 0x9b0   :  { %3256 = vtanh.f32 %v4197_v27 }
 0x9bd   :  { %v3257_v23 = vpop.eup %3256 }
 0x9be   :  { %v2012_v50 = vmul.f32 %v3257_v23, %v2004_v30 }
 0x9c0   :  { %v2013_v31 = vpack.c.bf16 %v2012_v50, %v2012_v50 }
 0x9c2   :  { %v2015_v63 = vrot.slane %v2013_v31, 1 }
 0x9c4   :  { %2050 = vmatmul.mubr.bf16.vlgmr.msra.gmra.mxu0 %v2015_v63  ;;  %2091 = vmatmul.mubr.bf16.vlgmr.msra.gmra.mxu1 %v2015_v63 }
 0x9c5   :  { %2138 = vmatpush1.bf16.msra.mxu0 %v3995_v17  ;;  %2179 = vmatpush1.bf16.msra.mxu1 %v3997_v35 }
 0x9c6   :  { %2139 = vmatprep.subr.bf16.mxu0 %v4000_v24  ;;  %2180 = vmatprep.subr.bf16.mxu1 %v4002_v19 }
 0x9c7   :  { %2169 = vmatprep.mubr.bf16.mxu0 %v4406_v41  ;;  %2210 = vmatprep.mubr.bf16.mxu1 %v4406_v41 }
 0x9c9   :  { %2140 = vmatpush1.bf16.msra.mxu0 %v4006_v6  ;;  %2181 = vmatpush1.bf16.msra.mxu1 %v4008_v55 }
 0x9ca   :  { %2141 = vmatprep.subr.bf16.mxu0 %v4012_v29  ;;  %2182 = vmatprep.subr.bf16.mxu1 %v4014_v38 }
 0x9cd   :  { %2142 = vmatpush1.bf16.msra.mxu0 %v4020_v49  ;;  %2183 = vmatpush1.bf16.msra.mxu1 %v4022_v59 }
 0x9ce   :  { %2143 = vmatprep.subr.bf16.mxu0 %v4026_v0  ;;  %2184 = vmatprep.subr.bf16.mxu1 %v4028_v5 }
 0x9d1   :  { %2144 = vmatpush1.bf16.msra.mxu0 %v4032_v58  ;;  %2185 = vmatpush1.bf16.msra.mxu1 %v4034_v53 }
 0x9d2   :  { %2145 = vmatprep.subr.bf16.mxu0 %v4038_v4  ;;  %2186 = vmatprep.subr.bf16.mxu1 %v4040_v61 }
 0x9d5   :  { %2146 = vmatpush1.bf16.msra.mxu0 %v4044_v1  ;;  %2187 = vmatpush1.bf16.msra.mxu1 %v4046_v44 }
 0x9d6   :  { %2147 = vmatprep.subr.bf16.mxu0 %v4050_v42  ;;  %2188 = vmatprep.subr.bf16.mxu1 %v4052_v51 }
 0x9d9   :  { %2148 = vmatpush1.bf16.msra.mxu0 %v4056_v57  ;;  %2189 = vmatpush1.bf16.msra.mxu1 %v4058_v45 }
 0x9da   :  { %2149 = vmatprep.subr.bf16.mxu0 %v4062_v43  ;;  %2190 = vmatprep.subr.bf16.mxu1 %v4064_v46 }
 0x9dd   :  { %2150 = vmatpush1.bf16.msra.mxu0 %v4068_v10  ;;  %2191 = vmatpush1.bf16.msra.mxu1 %v4070_v11 }
 0x9de   :  { %2151 = vmatprep.subr.bf16.mxu0 %v4074_v13  ;;  %2192 = vmatprep.subr.bf16.mxu1 %v4076_v14 }
 0x9e1   :  { %2152 = vmatpush1.bf16.msra.mxu0 %v4080_v15  ;;  %2193 = vmatpush1.bf16.msra.mxu1 %v4082_v16 }
 0x9e2   :  { %2257 = vmatprep.subr.bf16.mxu0 %v3982_v3  ;;  %2298 = vmatprep.subr.bf16.mxu1 %v3984_v7 }
 0xa84   :  { %v2051_v40 = vpop.f32.mrf.mxu0  ;;  %v2092_v52 = vpop.f32.mrf.mxu1 }
 0xa85   :  { %v2103_v62 = vrot.slane %v2051_v40, 4  ;;  %v2105_v28 = vrot.slane %v2092_v52, 4 }
 0xa86   :  { %v2053_v48 = vpop.f32.mrf.mxu0  ;;  %v2094_v34 = vpop.f32.mrf.mxu1 }
 0xa87   :  { %v2111_v36 = vadd.f32 %v2103_v62, %v4143_v2  ;;  %v2104_v25 = vrot.slane %v2053_v48, 4  ;;  %v2106_v18 = vrot.slane %v2094_v34, 4  ;;  %v2113_v37 = vadd.f32 %v2105_v28, %v4152_v26 }
 0xa88   :  { %v2055_v56 = vpop.f32.mrf.mxu0  ;;  %v2096_v20 = vpop.f32.mrf.mxu1  ;;  %v2126_v62 = vrot.slane %v4197_v27, 6 }
 0xa89   :  { %3258 = vtanh.f32 %v2111_v36  ;;  %v2112_v9 = vadd.f32 %v2104_v25, %v4145_v33  ;;  %v2114_v22 = vadd.f32 %v2106_v18, %v4148_v60 }
 0xa8a   :  { %v2056_v21 = vpop.f32.mrf.mxu0  ;;  %v2097_v8 = vpop.f32.mrf.mxu1 }
 0xa8b   :  { %3260 = vtanh.f32 %v2112_v9 }
 0xa8c   :  { %3262 = vtanh.f32 %v2114_v22 }
 0xa8d   :  { %3264 = vtanh.f32 %v2113_v37 }
 0xa96   :  { %v3259_v30 = vpop.eup %3258 }
 0xa97   :  { %v2119_v23 = vmul.f32 0.5, %v3259_v30 }
 0xa98   :  { %v3261_v50 = vpop.eup %3260 }
 0xa99   :  { %v2122_v31 = vadd.f32 0.5, %v2119_v23  ;;  %v2120_v63 = vmul.f32 0.5, %v3261_v50  ;;  %v3263_v48 = vpop.eup %3262 }
 0xa9a   :  { %v3265_v18 = vpop.eup %3264 }
 0xa9b   :  { %v2123_v40 = vadd.f32 0.5, %v2120_v63  ;;  %v2129_v36 = vmul.f32 %v3263_v48, %v2122_v31  ;;  %v2121_v52 = vmul.f32 0.5, %v3265_v18 }
 0xa9d   :  { %v2128_v34 = vmul.f32 %v2126_v62, %v2123_v40  ;;  %v2124_v56 = vadd.f32 0.5, %v2121_v52 }
 0xa9f   :  { %v4239_v25 = vadd.f32 %v2129_v36, %v2128_v34 }
 0xaa1   :  { %3266 = vtanh.f32 %v4239_v25 }
 0xaae   :  { %v3267_v20 = vpop.eup %3266 }
 0xaaf   :  { %v2132_v9 = vmul.f32 %v3267_v20, %v2124_v56 }
 0xab1   :  { %v2133_v21 = vpack.c.bf16 %v2132_v9, %v2132_v9 }
 0xab3   :  { %v2135_v8 = vrot.slane %v2133_v21, 2 }
 0xab5   :  { %2170 = vmatmul.mubr.bf16.vlgmr.msra.gmra.mxu0 %v2135_v8  ;;  %2211 = vmatmul.mubr.bf16.vlgmr.msra.gmra.mxu1 %v2135_v8 }
 0xab6   :  { %2258 = vmatpush1.bf16.msra.mxu0 %v3995_v17  ;;  %2299 = vmatpush1.bf16.msra.mxu1 %v3997_v35 }
 0xab7   :  { %2259 = vmatprep.subr.bf16.mxu0 %v4000_v24  ;;  %2300 = vmatprep.subr.bf16.mxu1 %v4002_v19 }
 0xab8   :  { %2289 = vmatprep.mubr.bf16.mxu0 %v4406_v41  ;;  %2330 = vmatprep.mubr.bf16.mxu1 %v4406_v41 }
 0xaba   :  { %2260 = vmatpush1.bf16.msra.mxu0 %v4006_v6  ;;  %2301 = vmatpush1.bf16.msra.mxu1 %v4008_v55 }
 0xabb   :  { %2261 = vmatprep.subr.bf16.mxu0 %v4012_v29  ;;  %2302 = vmatprep.subr.bf16.mxu1 %v4014_v38 }
 0xabe   :  { %2262 = vmatpush1.bf16.msra.mxu0 %v4020_v49  ;;  %2303 = vmatpush1.bf16.msra.mxu1 %v4022_v59 }
 0xabf   :  { %2263 = vmatprep.subr.bf16.mxu0 %v4026_v0  ;;  %2304 = vmatprep.subr.bf16.mxu1 %v4028_v5 }
 0xac2   :  { %2264 = vmatpush1.bf16.msra.mxu0 %v4032_v58  ;;  %2305 = vmatpush1.bf16.msra.mxu1 %v4034_v53 }
 0xac3   :  { %2265 = vmatprep.subr.bf16.mxu0 %v4038_v4  ;;  %2306 = vmatprep.subr.bf16.mxu1 %v4040_v61 }
 0xac6   :  { %2266 = vmatpush1.bf16.msra.mxu0 %v4044_v1  ;;  %2307 = vmatpush1.bf16.msra.mxu1 %v4046_v44 }
 0xac7   :  { %2267 = vmatprep.subr.bf16.mxu0 %v4050_v42  ;;  %2308 = vmatprep.subr.bf16.mxu1 %v4052_v51 }
 0xaca   :  { %2268 = vmatpush1.bf16.msra.mxu0 %v4056_v57  ;;  %2309 = vmatpush1.bf16.msra.mxu1 %v4058_v45 }
 0xacb   :  { %2269 = vmatprep.subr.bf16.mxu0 %v4062_v43  ;;  %2310 = vmatprep.subr.bf16.mxu1 %v4064_v46 }
 0xace   :  { %2270 = vmatpush1.bf16.msra.mxu0 %v4068_v10  ;;  %2311 = vmatpush1.bf16.msra.mxu1 %v4070_v11 }
 0xacf   :  { %2271 = vmatprep.subr.bf16.mxu0 %v4074_v13  ;;  %2312 = vmatprep.subr.bf16.mxu1 %v4076_v14 }
 0xad2   :  { %2272 = vmatpush1.bf16.msra.mxu0 %v4080_v15  ;;  %2313 = vmatpush1.bf16.msra.mxu1 %v4082_v16 }
 0xad3   :  { %2362 = vmatprep.subr.bf16.mxu0 %v3982_v3  ;;  %2403 = vmatprep.subr.bf16.mxu1 %v3984_v7 }
 0xb75   :  { %v2171_v27 = vpop.f32.mrf.mxu0  ;;  %v2212_v22 = vpop.f32.mrf.mxu1 }
 0xb76   :  { %v2223_v28 = vrot.slane %v2171_v27, 2  ;;  %v2225_v18 = vrot.slane %v2212_v22, 2  ;;  %v2246_v27 = vrot.slane %v4239_v25, 6 }
 0xb77   :  { %v2173_v37 = vpop.f32.mrf.mxu0  ;;  %v2214_v30 = vpop.f32.mrf.mxu1 }
 0xb78   :  { %v2231_v23 = vadd.f32 %v2223_v28, %v4143_v2  ;;  %v2224_v50 = vrot.slane %v2173_v37, 2  ;;  %v2226_v31 = vrot.slane %v2214_v30, 2  ;;  %v2233_v52 = vadd.f32 %v2225_v18, %v4152_v26 }
 0xb79   :  { %v2175_v63 = vpop.f32.mrf.mxu0  ;;  %v2216_v40 = vpop.f32.mrf.mxu1 }
 0xb7a   :  { %3268 = vtanh.f32 %v2231_v23  ;;  %v2232_v62 = vadd.f32 %v2224_v50, %v4145_v33  ;;  %v2234_v36 = vadd.f32 %v2226_v31, %v4148_v60 }
 0xb7b   :  { %v2176_v48 = vpop.f32.mrf.mxu0  ;;  %v2217_v34 = vpop.f32.mrf.mxu1 }
 0xb7c   :  { %3270 = vtanh.f32 %v2232_v62 }
 0xb7d   :  { %3272 = vtanh.f32 %v2234_v36 }
 0xb7e   :  { %3274 = vtanh.f32 %v2233_v52 }
 0xb87   :  { %v3269_v56 = vpop.eup %3268 }
 0xb88   :  { %v2239_v20 = vmul.f32 0.5, %v3269_v56 }
 0xb89   :  { %v3271_v9 = vpop.eup %3270 }
 0xb8a   :  { %v2242_v2 = vadd.f32 0.5, %v2239_v20  ;;  %v2240_v21 = vmul.f32 0.5, %v3271_v9  ;;  %v3273_v28 = vpop.eup %3272 }
 0xb8b   :  { %v3275_v60 = vpop.eup %3274 }
 0xb8c   :  { %v2243_v8 = vadd.f32 0.5, %v2240_v21  ;;  %v2249_v37 = vmul.f32 %v3273_v28, %v2242_v2  ;;  %v2241_v22 = vmul.f32 0.5, %v3275_v60 }
 0xb8e   :  { %v2248_v33 = vmul.f32 %v2246_v27, %v2243_v8  ;;  %v2244_v23 = vadd.f32 0.5, %v2241_v22 }
 0xb90   :  { %v4281_v30 = vadd.f32 %v2249_v37, %v2248_v33 }
 0xb92   :  { %3276 = vtanh.f32 %v4281_v30  ;;  %v2354_v33 = vrot.slane %v4281_v30, 6 }
 0xb9f   :  { %v3277_v26 = vpop.eup %3276 }
 0xba0   :  { %v2252_v50 = vmul.f32 %v3277_v26, %v2244_v23 }
 0xba2   :  { %v2253_v31 = vpack.c.bf16 %v2252_v50, %v2252_v50 }
 0xba4   :  { %v2255_v63 = vrot.slane %v2253_v31, 3 }
 0xba6   :  { %2290 = vmatmul.mubr.bf16.vlgmr.msra.gmra.mxu0 %v2255_v63  ;;  %2331 = vmatmul.mubr.bf16.vlgmr.msra.gmra.mxu1 %v2255_v63 }
 0xba7   :  { %2363 = vmatpush1.bf16.msra.mxu0 %v3995_v17  ;;  %2404 = vmatpush1.bf16.msra.mxu1 %v3997_v35 }
 0xba8   :  { %2364 = vmatprep.subr.bf16.mxu0 %v4000_v24  ;;  %2405 = vmatprep.subr.bf16.mxu1 %v4002_v19 }
 0xba9   :  { %2394 = vmatprep.mubr.bf16.mxu0 %v4406_v41  ;;  %2435 = vmatprep.mubr.bf16.mxu1 %v4406_v41 }
 0xbab   :  { %2365 = vmatpush1.bf16.msra.mxu0 %v4006_v6  ;;  %2406 = vmatpush1.bf16.msra.mxu1 %v4008_v55 }
 0xbac   :  { %2366 = vmatprep.subr.bf16.mxu0 %v4012_v29  ;;  %2407 = vmatprep.subr.bf16.mxu1 %v4014_v38 }
 0xbaf   :  { %2367 = vmatpush1.bf16.msra.mxu0 %v4020_v49  ;;  %2408 = vmatpush1.bf16.msra.mxu1 %v4022_v59 }
 0xbb0   :  { %2368 = vmatprep.subr.bf16.mxu0 %v4026_v0  ;;  %2409 = vmatprep.subr.bf16.mxu1 %v4028_v5 }
 0xbb3   :  { %2369 = vmatpush1.bf16.msra.mxu0 %v4032_v58  ;;  %2410 = vmatpush1.bf16.msra.mxu1 %v4034_v53 }
 0xbb4   :  { %2370 = vmatprep.subr.bf16.mxu0 %v4038_v4  ;;  %2411 = vmatprep.subr.bf16.mxu1 %v4040_v61 }
 0xbb7   :  { %2371 = vmatpush1.bf16.msra.mxu0 %v4044_v1  ;;  %2412 = vmatpush1.bf16.msra.mxu1 %v4046_v44 }
 0xbb8   :  { %2372 = vmatprep.subr.bf16.mxu0 %v4050_v42  ;;  %2413 = vmatprep.subr.bf16.mxu1 %v4052_v51 }
 0xbbb   :  { %2373 = vmatpush1.bf16.msra.mxu0 %v4056_v57  ;;  %2414 = vmatpush1.bf16.msra.mxu1 %v4058_v45 }
 0xbbc   :  { %2374 = vmatprep.subr.bf16.mxu0 %v4062_v43  ;;  %2415 = vmatprep.subr.bf16.mxu1 %v4064_v46 }
 0xbbf   :  { %2375 = vmatpush1.bf16.msra.mxu0 %v4068_v10  ;;  %2416 = vmatpush1.bf16.msra.mxu1 %v4070_v11 }
 0xbc0   :  { %2376 = vmatprep.subr.bf16.mxu0 %v4074_v13  ;;  %2417 = vmatprep.subr.bf16.mxu1 %v4076_v14 }
 0xbc3   :  { %2377 = vmatpush1.bf16.msra.mxu0 %v4080_v15  ;;  %2418 = vmatpush1.bf16.msra.mxu1 %v4082_v16 }
 0xbc4   :  { %2482 = vmatprep.subr.bf16.mxu0 %v3982_v3  ;;  %2523 = vmatprep.subr.bf16.mxu1 %v3984_v7 }
 0xc66   :  { %v2291_v25 = vpop.f32.mrf.mxu0  ;;  %v2332_v40 = vpop.f32.mrf.mxu1 }
 0xc67   :  { %v2339_v62 = vadd.f32 %v2291_v25, %v4135_v32  ;;  %v2341_v3 = vadd.f32 %v2332_v40, %v4137_v47 }
 0xc68   :  { %v2293_v48 = vpop.f32.mrf.mxu0  ;;  %v2334_v34 = vpop.f32.mrf.mxu1 }
 0xc69   :  { %3278 = vtanh.f32 %v2339_v62  ;;  %v2340_v36 = vadd.f32 %v2293_v48, %v4139_v12  ;;  %v2342_v56 = vadd.f32 %v2334_v34, %v4141_v54 }
 0xc6a   :  { %v2295_v18 = vpop.f32.mrf.mxu0  ;;  %v2336_v52 = vpop.f32.mrf.mxu1 }
 0xc6b   :  { %3280 = vtanh.f32 %v2340_v36 }
 0xc6c   :  { %v2296_v20 = vpop.f32.mrf.mxu0  ;;  %v2337_v9 = vpop.f32.mrf.mxu1  ;;  %3282 = vtanh.f32 %v2342_v56 }
 0xc6d   :  { %3284 = vtanh.f32 %v2341_v3 }
 0xc76   :  { %v3279_v7 = vpop.eup %3278 }
 0xc77   :  { %v2347_v2 = vmul.f32 0.5, %v3279_v7 }
 0xc78   :  { %v3281_v21 = vpop.eup %3280 }
 0xc79   :  { %v2350_v8 = vadd.f32 0.5, %v2347_v2  ;;  %v2348_v27 = vmul.f32 0.5, %v3281_v21  ;;  %v3283_v37 = vpop.eup %3282 }
 0xc7a   :  { %v3285_v26 = vpop.eup %3284 }
 0xc7b   :  { %v2351_v28 = vadd.f32 0.5, %v2348_v27  ;;  %v2357_v22 = vmul.f32 %v3283_v37, %v2350_v8  ;;  %v2349_v50 = vmul.f32 0.5, %v3285_v26  ;;  %v3352_v37 = vld [vmem:[#allocation5 + $0x300] ss:$16 sps:$4 sm:$0xff]  }
 0xc7c   :  { %v3356_v26 = vld [vmem:[#allocation5 + $0x2e0] ss:$16 sps:$4 sm:$0xff]  }
 0xc7d   :  { %v2356_v60 = vmul.f32 %v2354_v33, %v2351_v28  ;;  %v2352_v31 = vadd.f32 0.5, %v2349_v50  ;;  %v3357_v50 = vld [vmem:[#allocation5 + $0x2e8] ss:$16 sps:$4 sm:$0xff]  }
 0xc7f   :  { %v4323_v23 = vadd.f32 %v2357_v22, %v2356_v60  ;;  %v3353_v60 = vld [vmem:[#allocation5 + $0x308] ss:$16 sps:$4 sm:$0xff]   ;;  %v3354_v22 = vld [vmem:[#allocation5 + $0x2e4] ss:$16 sps:$4 sm:$0xff]  }
 0xc81   :  { %3286 = vtanh.f32 %v4323_v23  ;;  %v2471_v52 = vrot.slane %v4323_v23, 6  ;;  %v3355_v23 = vld [vmem:[#allocation5 + $0x2ec] ss:$16 sps:$4 sm:$0xff]  }
 0xc8e   :  { %v3287_v63 = vpop.eup %3286 }
 0xc8f   :  { %v2360_v25 = vmul.f32 %v3287_v63, %v2352_v31  ;;  %v3358_v31 = vld [vmem:[#allocation5 + $0x2c4] ss:$16 sps:$4 sm:$0xff]   ;;  %v3359_v63 = vld [vmem:[#allocation5 + $0x2cc] ss:$16 sps:$4 sm:$0xff]  }
 0xc91   :  { %v2361_v40 = vpack.c.bf16 %v2360_v25, %v2360_v25  ;;  %v3360_v25 = vld [vmem:[#allocation5 + $0x2c0] ss:$16 sps:$4 sm:$0xff]  }
 0xc93   :  { %2395 = vmatmul.mubr.bf16.vlgmr.msra.gmra.mxu0 %v2361_v40  ;;  %2436 = vmatmul.mubr.bf16.vlgmr.msra.gmra.mxu1 %v2361_v40  ;;  %v3361_v40 = vld [vmem:[#allocation5 + $0x2c8] ss:$16 sps:$4 sm:$0xff]  }
 0xc94   :  { %2483 = vmatpush1.bf16.msra.mxu0 %v3995_v17  ;;  %2524 = vmatpush1.bf16.msra.mxu1 %v3997_v35  ;;  %v3350_v17 = vld [vmem:[#allocation5 + $0x304] ss:$16 sps:$4 sm:$0xff]   ;;  %v3351_v35 = vld [vmem:[#allocation5 + $0x30c] ss:$16 sps:$4 sm:$0xff]  }
 0xc95   :  { %2484 = vmatprep.subr.bf16.mxu0 %v4000_v24  ;;  %2525 = vmatprep.subr.bf16.mxu1 %v4002_v19 }
 0xc96   :  { %2514 = vmatprep.mubr.bf16.mxu0 %v4406_v41  ;;  %2555 = vmatprep.mubr.bf16.mxu1 %v4406_v41 }
 0xc98   :  { %2485 = vmatpush1.bf16.msra.mxu0 %v4006_v6  ;;  %2526 = vmatpush1.bf16.msra.mxu1 %v4008_v55 }
 0xc99   :  { %2486 = vmatprep.subr.bf16.mxu0 %v4012_v29  ;;  %2527 = vmatprep.subr.bf16.mxu1 %v4014_v38 }
 0xc9c   :  { %2487 = vmatpush1.bf16.msra.mxu0 %v4020_v49  ;;  %2528 = vmatpush1.bf16.msra.mxu1 %v4022_v59 }
 0xc9d   :  { %2488 = vmatprep.subr.bf16.mxu0 %v4026_v0  ;;  %2529 = vmatprep.subr.bf16.mxu1 %v4028_v5 }
 0xca0   :  { %2489 = vmatpush1.bf16.msra.mxu0 %v4032_v58  ;;  %2530 = vmatpush1.bf16.msra.mxu1 %v4034_v53 }
 0xca1   :  { %2490 = vmatprep.subr.bf16.mxu0 %v4038_v4  ;;  %2531 = vmatprep.subr.bf16.mxu1 %v4040_v61 }
 0xca4   :  { %2491 = vmatpush1.bf16.msra.mxu0 %v4044_v1  ;;  %2532 = vmatpush1.bf16.msra.mxu1 %v4046_v44 }
 0xca5   :  { %2492 = vmatprep.subr.bf16.mxu0 %v4050_v42  ;;  %2533 = vmatprep.subr.bf16.mxu1 %v4052_v51 }
 0xca8   :  { %2493 = vmatpush1.bf16.msra.mxu0 %v4056_v57  ;;  %2534 = vmatpush1.bf16.msra.mxu1 %v4058_v45 }
 0xca9   :  { %2494 = vmatprep.subr.bf16.mxu0 %v4062_v43  ;;  %2535 = vmatprep.subr.bf16.mxu1 %v4064_v46 }
 0xcac   :  { %2495 = vmatpush1.bf16.msra.mxu0 %v4068_v10  ;;  %2536 = vmatpush1.bf16.msra.mxu1 %v4070_v11 }
 0xcad   :  { %2496 = vmatprep.subr.bf16.mxu0 %v4074_v13  ;;  %2537 = vmatprep.subr.bf16.mxu1 %v4076_v14 }
 0xcb0   :  { %2497 = vmatpush1.bf16.msra.mxu0 %v4080_v15  ;;  %2538 = vmatpush1.bf16.msra.mxu1 %v4082_v16 }
 0xcb1   :  { %2602 = vmatprep.subr.bf16.mxu0 %v3350_v17  ;;  %2643 = vmatprep.subr.bf16.mxu1 %v3351_v35  ;;  %v3362_v17 = vld [vmem:[#allocation5 + $0x2a4] ss:$16 sps:$4 sm:$0xff]   ;;  %v3363_v35 = vld [vmem:[#allocation5 + $0x2ac] ss:$16 sps:$4 sm:$0xff]  }
 0xd53   :  { %v2396_v24 = vpop.f32.mrf.mxu0  ;;  %v2437_v19 = vpop.f32.mrf.mxu1 }
 0xd54   :  { %v2448_v6 = vrot.slane %v2396_v24, 6  ;;  %v2450_v1 = vrot.slane %v2437_v19, 6  ;;  %v3364_v24 = vld [vmem:[#allocation5 + $0x2a0] ss:$16 sps:$4 sm:$0xff]   ;;  %v3365_v19 = vld [vmem:[#allocation5 + $0x2a8] ss:$16 sps:$4 sm:$0xff]  }
 0xd55   :  { %v2398_v55 = vpop.f32.mrf.mxu0  ;;  %v2439_v29 = vpop.f32.mrf.mxu1 }
 0xd56   :  { %v2456_v38 = vadd.f32 %v2448_v6, %v4135_v32  ;;  %v2449_v49 = vrot.slane %v2398_v55, 6  ;;  %v2451_v59 = vrot.slane %v2439_v29, 6  ;;  %v2458_v44 = vadd.f32 %v2450_v1, %v4137_v47  ;;  %v3367_v6 = vld [vmem:[#allocation5 + $0x28c] ss:$16 sps:$4 sm:$0xff]   ;;  %v3368_v55 = vld [vmem:[#allocation5 + $0x280] ss:$16 sps:$4 sm:$0xff]  }
 0xd57   :  { %v2400_v0 = vpop.f32.mrf.mxu0  ;;  %v2441_v5 = vpop.f32.mrf.mxu1  ;;  %v3369_v29 = vld [vmem:[#allocation5 + $0x288] ss:$16 sps:$4 sm:$0xff]  }
 0xd58   :  { %3288 = vtanh.f32 %v2456_v38  ;;  %v2457_v58 = vadd.f32 %v2449_v49, %v4139_v12  ;;  %v2459_v61 = vadd.f32 %v2451_v59, %v4141_v54 }
 0xd59   :  { %v2401_v53 = vpop.f32.mrf.mxu0  ;;  %v2442_v4 = vpop.f32.mrf.mxu1 }
 0xd5a   :  { %3290 = vtanh.f32 %v2457_v58 }
 0xd5b   :  { %3292 = vtanh.f32 %v2459_v61 }
 0xd5c   :  { %3294 = vtanh.f32 %v2458_v44 }
 0xd65   :  { %v3289_v30 = vpop.eup %3288 }
 0xd66   :  { %v2464_v62 = vmul.f32 0.5, %v3289_v30 }
 0xd67   :  { %v3291_v48 = vpop.eup %3290 }
 0xd68   :  { %v2467_v34 = vadd.f32 0.5, %v2464_v62  ;;  %v2465_v36 = vmul.f32 0.5, %v3291_v48  ;;  %v3293_v56 = vpop.eup %3292 }
 0xd69   :  { %v3295_v7 = vpop.eup %3294 }
 0xd6a   :  { %v2468_v18 = vadd.f32 0.5, %v2465_v36  ;;  %v2474_v9 = vmul.f32 %v3293_v56, %v2467_v34  ;;  %v2466_v2 = vmul.f32 0.5, %v3295_v7 }
 0xd6c   :  { %v2473_v20 = vmul.f32 %v2471_v52, %v2468_v18  ;;  %v2469_v21 = vadd.f32 0.5, %v2466_v2  ;;  %v3150_v2 = vld [vmem:[#allocation5 + $0x420] ss:$16 sps:$4 sm:$0xff]  }
 0xd6e   :  { %v4363_v3 = vadd.f32 %v2474_v9, %v2473_v20 }
 0xd70   :  { %3296 = vtanh.f32 %v4363_v3  ;;  %v2591_v44 = vrot.slane %v4363_v3, 6  ;;  %v3151_v3 = vld [vmem:[#allocation5 + $0x400] ss:$16 sps:$4 sm:$0xff]  }
 0xd7d   :  { %v3297_v8 = vpop.eup %3296 }
 0xd7e   :  { %v2477_v27 = vmul.f32 %v3297_v8, %v2469_v21  ;;  %v3443_v21 = vmov 0.0   ;;  %v3152_v8 = vld [vmem:[#allocation5 + $0x3e0] ss:$16 sps:$4 sm:$0xff]  }
 0xd80   :  { %v2478_v28 = vpack.c.bf16 %v2477_v27, %v2477_v27  ;;  %v3153_v27 = vld [vmem:[#allocation5 + $0x3c0] ss:$16 sps:$4 sm:$0xff]  }
 0xd82   :  { %v2480_v33 = vrot.slane %v2478_v28, 1  ;;  %v3154_v28 = vld [vmem:[#allocation5 + $0x3a0] ss:$16 sps:$4 sm:$0xff]  }
 0xd84   :  { %2515 = vmatmul.mubr.bf16.vlgmr.msra.gmra.mxu0 %v2480_v33  ;;  %2556 = vmatmul.mubr.bf16.vlgmr.msra.gmra.mxu1 %v2480_v33  ;;  %v3155_v33 = vld [vmem:[#allocation5 + $0x380] ss:$16 sps:$4 sm:$0xff]  }
 0xd85   :  { %2603 = vmatpush1.bf16.msra.mxu0 %v3352_v37  ;;  %2644 = vmatpush1.bf16.msra.mxu1 %v3353_v60  ;;  %v3156_v37 = vld [vmem:[#allocation5 + $0x360] ss:$16 sps:$4 sm:$0xff]  }
 0xd86   :  { %2604 = vmatprep.subr.bf16.mxu0 %v3354_v22  ;;  %2645 = vmatprep.subr.bf16.mxu1 %v3355_v23  ;;  %v3157_v60 = vld [vmem:[#allocation5 + $0x340] ss:$16 sps:$4 sm:$0xff]  }
 0xd87   :  { %2634 = vmatprep.mubr.bf16.mxu0 %v4406_v41  ;;  %2675 = vmatprep.mubr.bf16.mxu1 %v4406_v41  ;;  %v3366_v41 = vld [vmem:[#allocation5 + $0x284] ss:$16 sps:$4 sm:$0xff]  }
 0xd89   :  { %2605 = vmatpush1.bf16.msra.mxu0 %v3356_v26  ;;  %2646 = vmatpush1.bf16.msra.mxu1 %v3357_v50 }
 0xd8a   :  { %2606 = vmatprep.subr.bf16.mxu0 %v3358_v31  ;;  %2647 = vmatprep.subr.bf16.mxu1 %v3359_v63 }
 0xd8d   :  { %2607 = vmatpush1.bf16.msra.mxu0 %v3360_v25  ;;  %2648 = vmatpush1.bf16.msra.mxu1 %v3361_v40 }
 0xd8e   :  { %2608 = vmatprep.subr.bf16.mxu0 %v3362_v17  ;;  %2649 = vmatprep.subr.bf16.mxu1 %v3363_v35 }
 0xd91   :  { %2609 = vmatpush1.bf16.msra.mxu0 %v3364_v24  ;;  %2650 = vmatpush1.bf16.msra.mxu1 %v3365_v19 }
 0xd92   :  { %2610 = vmatprep.subr.bf16.mxu0 %v3366_v41  ;;  %2651 = vmatprep.subr.bf16.mxu1 %v3367_v6 }
 0xd95   :  { %2611 = vmatpush1.bf16.msra.mxu0 %v3368_v55  ;;  %2652 = vmatpush1.bf16.msra.mxu1 %v3369_v29 }
 0xd96   :  { %2612 = vmatprep.subr.bf16.mxu0 %v4050_v42  ;;  %2653 = vmatprep.subr.bf16.mxu1 %v4052_v51 }
 0xd99   :  { %2613 = vmatpush1.bf16.msra.mxu0 %v4056_v57  ;;  %2654 = vmatpush1.bf16.msra.mxu1 %v4058_v45 }
 0xd9a   :  { %2614 = vmatprep.subr.bf16.mxu0 %v4062_v43  ;;  %2655 = vmatprep.subr.bf16.mxu1 %v4064_v46 }
 0xd9d   :  { %2615 = vmatpush1.bf16.msra.mxu0 %v4068_v10  ;;  %2656 = vmatpush1.bf16.msra.mxu1 %v4070_v11 }
 0xd9e   :  { %2616 = vmatprep.subr.bf16.mxu0 %v4074_v13  ;;  %2657 = vmatprep.subr.bf16.mxu1 %v4076_v14 }
 0xda1   :  { %2617 = vmatpush1.bf16.msra.mxu0 %v4080_v15  ;;  %2658 = vmatpush1.bf16.msra.mxu1 %v4082_v16 }
 0xda2   :  { %2969 = vmatprep.subr.bf16.mxu0 %v3443_v21 }
 0xe44   :  { %v2516_v42 = vpop.f32.mrf.mxu0  ;;  %v2557_v51 = vpop.f32.mrf.mxu1 }
 0xe45   :  { %v2568_v57 = vrot.slane %v2516_v42, 4  ;;  %v2570_v16 = vrot.slane %v2557_v51, 4 }
 0xe46   :  { %v2518_v45 = vpop.f32.mrf.mxu0  ;;  %v2559_v38 = vpop.f32.mrf.mxu1 }
 0xe47   :  { %v2576_v43 = vadd.f32 %v2568_v57, %v4135_v32  ;;  %v2569_v46 = vrot.slane %v2518_v45, 4  ;;  %v2571_v49 = vrot.slane %v2559_v38, 4  ;;  %v2578_v0 = vadd.f32 %v2570_v16, %v4137_v47  ;;  %v2734_v16 = vld [vmem:[#allocation5 + $0x320] sm:$0x2] }
 0xe48   :  { %v2520_v10 = vpop.f32.mrf.mxu0  ;;  %v2561_v59 = vpop.f32.mrf.mxu1 }
 0xe49   :  { %3298 = vtanh.f32 %v2576_v43  ;;  %v2577_v11 = vadd.f32 %v2569_v46, %v4139_v12  ;;  %v2579_v15 = vadd.f32 %v2571_v49, %v4141_v54 }
 0xe4a   :  { %v2521_v13 = vpop.f32.mrf.mxu0  ;;  %v2562_v14 = vpop.f32.mrf.mxu1 }
 0xe4b   :  { %3300 = vtanh.f32 %v2577_v11 }
 0xe4c   :  { %3302 = vtanh.f32 %v2579_v15 }
 0xe4d   :  { %3304 = vtanh.f32 %v2578_v0  ;;  %v2735_v0 = vunpack.c.l.bf16 %v2734_v16 }
 0xe56   :  { %v3299_v5 = vpop.eup %3298 }
 0xe57   :  { %v2584_v58 = vmul.f32 0.5, %v3299_v5  ;;  %v2739_v5 = vsub.s32 2, %v3607_v39 }
 0xe58   :  { %v3301_v53 = vpop.eup %3300 }
 0xe59   :  { %v2587_v4 = vadd.f32 0.5, %v2584_v58  ;;  %v2585_v61 = vmul.f32 0.5, %v3301_v53  ;;  %v3303_v30 = vpop.eup %3302  ;;  %v2740_v58 = vrot.slane %v2735_v0, %v2739_v5 }
 0xe5a   :  { %v3305_v36 = vpop.eup %3304 }
 0xe5b   :  { %v2588_v1 = vadd.f32 0.5, %v2585_v61  ;;  %v2594_v48 = vmul.f32 %v3303_v30, %v2587_v4  ;;  %v2586_v18 = vmul.f32 0.5, %v3305_v36 }
 0xe5d   :  { %v2593_v62 = vmul.f32 %v2591_v44, %v2588_v1  ;;  %v2589_v52 = vadd.f32 0.5, %v2586_v18 }
 0xe5f   :  { %v4385_v34 = vadd.f32 %v2594_v48, %v2593_v62 }
 0xe61   :  { %3306 = vtanh.f32 %v4385_v34  ;;  %v2711_v43 = vrot.slane %v4385_v34, 6 }
 0xe6e   :  { %v3307_v56 = vpop.eup %3306 }
 0xe6f   :  { %v2597_v20 = vmul.f32 %v3307_v56, %v2589_v52 }
 0xe71   :  { %v2598_v9 = vpack.c.bf16 %v2597_v20, %v2597_v20 }
 0xe73   :  { %v2600_v7 = vrot.slane %v2598_v9, 2 }
 0xe75   :  { %2635 = vmatmul.mubr.bf16.vlgmr.msra.gmra.mxu0 %v2600_v7  ;;  %2676 = vmatmul.mubr.bf16.vlgmr.msra.gmra.mxu1 %v2600_v7 }
 0xe76   :  { %2970 = vmatpush3.bf16.msra.mxu0 %v3150_v2  ;;  %2985 = vmatprep.mubr.msk.bf16.mxu0 %vm3444_vm4, %v3443_v21 }
 0xe77   :  { %2971 = vmatprep.subr.bf16.mxu0 %v3443_v21 }
 0xe7a   :  { %2972 = vmatpush3.bf16.msra.mxu0 %v3151_v3 }
 0xe7b   :  { %2973 = vmatprep.subr.bf16.mxu0 %v3443_v21 }
 0xe7e   :  { %2974 = vmatpush3.bf16.msra.mxu0 %v3152_v8 }
 0xe7f   :  { %2975 = vmatprep.subr.bf16.mxu0 %v3443_v21 }
 0xe82   :  { %2976 = vmatpush3.bf16.msra.mxu0 %v3153_v27 }
 0xe83   :  { %2977 = vmatprep.subr.bf16.mxu0 %v3443_v21 }
 0xe86   :  { %2978 = vmatpush3.bf16.msra.mxu0 %v3154_v28 }
 0xe87   :  { %2979 = vmatprep.subr.bf16.mxu0 %v3443_v21 }
 0xe8a   :  { %2980 = vmatpush3.bf16.msra.mxu0 %v3155_v33 }
 0xe8b   :  { %2981 = vmatprep.subr.bf16.mxu0 %v3443_v21 }
 0xe8e   :  { %2982 = vmatpush3.bf16.msra.mxu0 %v3156_v37 }
 0xe8f   :  { %2983 = vmatprep.subr.bf16.mxu0 %v3443_v21 }
 0xe92   :  { %2984 = vmatpush3.bf16.msra.mxu0 %v3157_v60 }
 0xf35   :  { %v2636_v22 = vpop.f32.mrf.mxu0  ;;  %v2677_v23 = vpop.f32.mrf.mxu1 }
 0xf36   :  { %v2688_v26 = vrot.slane %v2636_v22, 2  ;;  %v2690_v55 = vrot.slane %v2677_v23, 2 }
 0xf37   :  { %v2638_v50 = vpop.f32.mrf.mxu0  ;;  %v2679_v31 = vpop.f32.mrf.mxu1 }
 0xf38   :  { %v2696_v63 = vadd.f32 %v2688_v26, %v4135_v32  ;;  %v2689_v25 = vrot.slane %v2638_v50, 2  ;;  %v2691_v40 = vrot.slane %v2679_v31, 2  ;;  %v2698_v29 = vadd.f32 %v2690_v55, %v4137_v47 }
 0xf39   :  { %v2640_v17 = vpop.f32.mrf.mxu0  ;;  %v2681_v35 = vpop.f32.mrf.mxu1 }
 0xf3a   :  { %3308 = vtanh.f32 %v2696_v63  ;;  %v2697_v24 = vadd.f32 %v2689_v25, %v4139_v12  ;;  %v2699_v6 = vadd.f32 %v2691_v40, %v4141_v54 }
 0xf3b   :  { %v2641_v19 = vpop.f32.mrf.mxu0  ;;  %v2682_v41 = vpop.f32.mrf.mxu1 }
 0xf3c   :  { %3310 = vtanh.f32 %v2697_v24 }
 0xf3d   :  { %3312 = vtanh.f32 %v2699_v6 }
 0xf3e   :  { %3314 = vtanh.f32 %v2698_v29 }
 0xf47   :  { %v3309_v42 = vpop.eup %3308 }
 0xf48   :  { %v2704_v51 = vmul.f32 0.5, %v3309_v42 }
 0xf49   :  { %v3311_v57 = vpop.eup %3310 }
 0xf4a   :  { %v2707_v32 = vadd.f32 0.5, %v2704_v51  ;;  %v2705_v45 = vmul.f32 0.5, %v3311_v57  ;;  %v3313_v46 = vpop.eup %3312 }
 0xf4b   :  { %v3315_v59 = vpop.eup %3314 }
 0xf4c   :  { %v2708_v38 = vadd.f32 0.5, %v2705_v45  ;;  %v2714_v49 = vmul.f32 %v3313_v46, %v2707_v32  ;;  %v2706_v54 = vmul.f32 0.5, %v3315_v59 }
 0xf4e   :  { %v2713_v12 = vmul.f32 %v2711_v43, %v2708_v38  ;;  %v2709_v11 = vadd.f32 0.5, %v2706_v54 }
 0xf50   :  { %v2715_v10 = vadd.f32 %v2714_v49, %v2713_v12 }
 0xf52   :  { %3316 = vtanh.f32 %v2715_v10 }
 0xf5f   :  { %v3317_v13 = vpop.eup %3316 }
 0xf60   :  { %v2717_v14 = vmul.f32 %v3317_v13, %v2709_v11 }
 0xf62   :  { %v2736_v47 = vpack.c.bf16 %v2717_v14, %v2717_v14 }
 0xf64   :  { %v2742_v15 = vrot.slane %v2736_v47, 3 }
 0xf66   :  { %2986 = vmatmul.mubr.bf16.vlgmr.msra.gmra.mxu0 %v2742_v15 }
0x1026   :  { %v2826_v53 = vpop.f32.mrf.mxu0 }
0x1027   :  { %v2827_v4 = vadd.f32 %v2826_v53, %v2740_v58 }
0x1028   :  { %v2987_v61 = vpop.f32.mrf.mxu0 }
0x1029   :  { %2832 = vst [vmem:[#allocation7] sm:$0x3] %v2827_v4 }
0x102a   :  { %v2829_v1 = vpop.f32.mrf.mxu0 }
0x102b   :  { %3421 = shalt.err (!%p3418_p0)
}
0x102c   :  { %2842 = dma.vmem_to_hbm [thread:$0]  %s2840_s1, 32, %s4399_s2, [#allocation4]   ;;  %v2988_v39 = vpop.f32.mrf.mxu0 }
0x102d   :  { %3434 = dma.done.wait [#allocation4], 32  }
0x102e   :  { %3435 = vsyncadd [#allocation4], 4294967264 }
0x102f   :  { %2846 = vsyncpa [#allocation3], 1 }
0x1030   :  { %2847 = vsyncpa [#allocation6], 1 }
0x1031   :  { %2848 = vsyncpa [#allocation4], 1 }

</bundles_post_ra>
